<compile_context>
chip_gen: v7x
topology: tpu7x:2x2x1
jax: 0.10.0
libtpu: 0.0.40
codegen_flags: <defaults>
</compile_context>

<pallas_src>
import jax
import jax.numpy as jnp
from jax.experimental import pallas as pl
from jax.experimental.pallas import tpu as pltpu


def _round_up(a, m):
    return ((a + m - 1) // m) * m


def encoder_kernel(x_ref, w1_ref, b1_ref, w2_ref, b2_ref, out_ref):
    # x_ref:  (tn, 8)  f32   streamed batch tile
    # w1_ref: (8, 16)  f32   fc1 weight (pre-transposed), VMEM-resident
    # b1_ref: (1, 16)  f32
    # w2_ref: (16, 8)  f32   fc2 weight (pre-transposed), VMEM-resident
    # b2_ref: (1, 8)   f32
    # out_ref:(tn, 8)  f32
    x = x_ref[...]

    # fc1: Linear(8 -> 16) + ReLU
    h = jnp.dot(x, w1_ref[...], preferred_element_type=jnp.float32)
    h = jnp.maximum(h + b1_ref[...], 0.0)

    # fc2: Linear(16 -> 8)
    y = jnp.dot(h, w2_ref[...], preferred_element_type=jnp.float32)
    out_ref[...] = (y + b2_ref[...]).astype(out_ref.dtype)


def encoder_forward(x, w1, b1, w2, b2, *, tile_n=2048, small_batch_rows=1024):
    """x: (N, 8) f32; w1: (8, 16); b1: (16,); w2: (16, 8); b2: (8,). -> (N, 8) f32.

    Weights are stored pre-transposed as (in_features, out_features),
    i.e. w1 = fc1.weight.T, w2 = fc2.weight.T.
    """
    N, d_in = x.shape
    h_dim = w1.shape[1]
    d_out = w2.shape[1]

    w1 = w1.astype(jnp.float32)
    w2 = w2.astype(jnp.float32)
    b1_2d = b1.reshape(1, h_dim).astype(jnp.float32)
    b2_2d = b2.reshape(1, d_out).astype(jnp.float32)

    # Small-batch fast path: below ~1K rows the wall time is all custom-call
    # launch + DMA-descriptor overhead, so a fused XLA HLO is strictly faster.
    if N < small_batch_rows:
        h = jnp.maximum(x @ w1 + b1_2d, 0.0)
        return h @ w2 + b2_2d

    # Batch tile: multiple of 8 sublanes, <= tile_n, and chosen so the grid has
    # at least 2 steps when possible (v7x megacore split via "parallel").
    n_rounded = _round_up(N, 8)
    if n_rounded >= 16:
        tn = min(tile_n, _round_up((n_rounded + 1) // 2, 8))
    else:
        tn = n_rounded
    n_pad = _round_up(n_rounded, tn)
    grid = (n_pad // tn,)

    x_p = x if n_pad == N else jnp.pad(x, ((0, n_pad - N), (0, 0)))

    # Real (unpadded-width) traffic: only x and out stream through HBM;
    # weights/biases are tiny and VMEM-resident via constant index_maps.
    flops = 2 * n_pad * (d_in * h_dim + h_dim * d_out)
    bytes_accessed = (
        n_pad * d_in * 4 + n_pad * d_out * 4
        + w1.size * 4 + w2.size * 4 + b1_2d.size * 4 + b2_2d.size * 4
    )

    out = pl.pallas_call(
        encoder_kernel,
        out_shape=jax.ShapeDtypeStruct((n_pad, d_out), jnp.float32),
        grid=grid,
        in_specs=[
            pl.BlockSpec((tn, d_in), lambda i: (i, 0)),      # x tile (streamed)
            pl.BlockSpec((d_in, h_dim), lambda i: (0, 0)),   # w1 (VMEM-resident)
            pl.BlockSpec((1, h_dim), lambda i: (0, 0)),      # b1 (VMEM-resident)
            pl.BlockSpec((h_dim, d_out), lambda i: (0, 0)),  # w2 (VMEM-resident)
            pl.BlockSpec((1, d_out), lambda i: (0, 0)),      # b2 (VMEM-resident)
        ],
        out_specs=pl.BlockSpec((tn, d_out), lambda i: (i, 0)),
        compiler_params=pltpu.CompilerParams(
            dimension_semantics=("parallel",),
        ),
        cost_estimate=pl.CostEstimate(
            flops=flops, transcendentals=0, bytes_accessed=bytes_accessed
        ),
    )(x_p, w1, b1_2d, w2, b2_2d)

    # Strip batch padding back to the logical (N, 8) result.
    return out[:N]


def reference_forward(x, w1, b1, w2, b2):
    h = jnp.maximum(x @ w1 + b1, 0.0)
    return h @ w2 + b2


if __name__ == "__main__":
    D_IN, H, D_OUT = 8, 16, 8

    key = jax.random.PRNGKey(0)
    kx1, kx2, k1, k2, k3, k4 = jax.random.split(key, 6)

    # PyTorch-Linear-style uniform init; weights stored pre-transposed (in, out).
    lim1 = 1.0 / jnp.sqrt(jnp.float32(D_IN))
    lim2 = 1.0 / jnp.sqrt(jnp.float32(H))
    w1 = jax.random.uniform(k1, (D_IN, H), jnp.float32, -lim1, lim1)
    b1 = jax.random.uniform(k2, (H,), jnp.float32, -lim1, lim1)
    w2 = jax.random.uniform(k3, (H, D_OUT), jnp.float32, -lim2, lim2)
    b2 = jax.random.uniform(k4, (D_OUT,), jnp.float32, -lim2, lim2)

    # 1) Deployed toy size (N=8): takes the fused-XLA fast path.
    x_small = jax.random.normal(kx1, (8, D_IN), dtype=jnp.float32)
    out_small = jax.block_until_ready(encoder_forward(x_small, w1, b1, w2, b2))
    ref_small = reference_forward(x_small, w1, b1, w2, b2)
    assert out_small.shape == (8, D_OUT)
    assert jnp.allclose(out_small, ref_small, atol=1e-5, rtol=1e-5), (
        f"fast path max abs err = {jnp.max(jnp.abs(out_small - ref_small))}"
    )

    # 2) Larger batch (N=2048): exercises the Pallas kernel with a 2-step grid.
    x_big = jax.random.normal(kx2, (2048, D_IN), dtype=jnp.float32)
    out_big = jax.block_until_ready(encoder_forward(x_big, w1, b1, w2, b2))
    ref_big = reference_forward(x_big, w1, b1, w2, b2)
    assert out_big.shape == (2048, D_OUT)
    # Tolerance covers whatever MXU pass-decomposition Mosaic picks for f32 dot.
    assert jnp.allclose(out_big, ref_big, atol=2e-2, rtol=2e-2), (
        f"pallas path max abs err = {jnp.max(jnp.abs(out_big - ref_big))}"
    )

    print("KERNEL_OK")
</pallas_src>

<mosaic_0001>
module attributes {stable_mosaic.version = 11 : i64} {
  func.func @encoder_kernel(%arg0: i32, %arg1: memref<1024x8xf32, #tpu.memory_space<vmem>>, %arg2: memref<8x16xf32, #tpu.memory_space<vmem>>, %arg3: memref<1x16xf32, #tpu.memory_space<vmem>>, %arg4: memref<16x8xf32, #tpu.memory_space<vmem>>, %arg5: memref<1x8xf32, #tpu.memory_space<vmem>>, %arg6: memref<1024x8xf32, #tpu.memory_space<vmem>>) attributes {dimension_semantics = [#tpu.dimension_semantics<parallel>], iteration_bounds = array<i64: 2>, scalar_prefetch = 0 : i64, scratch_operands = 0 : i64, tpu.core_type = #tpu.core_type<tc>, window_params = [{transform_indices = @transform_0, window_bounds = array<i64: 1024, 8>}, {pipeline_mode = #tpu.pipeline_mode<synchronous>, transform_indices = @transform_1, window_bounds = array<i64: 8, 16>}, {pipeline_mode = #tpu.pipeline_mode<synchronous>, transform_indices = @transform_2, window_bounds = array<i64: 1, 16>}, {pipeline_mode = #tpu.pipeline_mode<synchronous>, transform_indices = @transform_3, window_bounds = array<i64: 16, 8>}, {pipeline_mode = #tpu.pipeline_mode<synchronous>, transform_indices = @transform_4, window_bounds = array<i64: 1, 8>}, {transform_indices = @transform_5, window_bounds = array<i64: 1024, 8>}]} {
    %c0 = arith.constant 0 : index
    %c0_0 = arith.constant 0 : index
    %0 = vector.load %arg1[%c0, %c0_0] : memref<1024x8xf32, #tpu.memory_space<vmem>>, vector<1024x8xf32>
    %c0_1 = arith.constant 0 : index
    %c0_2 = arith.constant 0 : index
    %1 = vector.load %arg2[%c0_1, %c0_2] : memref<8x16xf32, #tpu.memory_space<vmem>>, vector<8x16xf32>
    %cst = arith.constant dense<0.000000e+00> : vector<1024x16xf32>
    %2 = tpu.matmul %0, %1, %cst {dimension_numbers = #tpu.dot_dimension_numbers<[1], [0], [0], [1], [0, 0, 1, 1], [], []>} : vector<1024x8xf32>, vector<8x16xf32>, vector<1024x16xf32> -> vector<1024x16xf32>
    %c0_3 = arith.constant 0 : index
    %c0_4 = arith.constant 0 : index
    %3 = vector.load %arg3[%c0_3, %c0_4] : memref<1x16xf32, #tpu.memory_space<vmem>>, vector<1x16xf32>
    %4 = vector.broadcast %3 : vector<1x16xf32> to vector<1024x16xf32>
    %5 = arith.addf %2, %4 : vector<1024x16xf32>
    %cst_5 = arith.constant 0.000000e+00 : f32
    %6 = vector.broadcast %cst_5 : f32 to vector<1024x16xf32>
    %7 = arith.maximumf %5, %6 : vector<1024x16xf32>
    %c0_6 = arith.constant 0 : index
    %c0_7 = arith.constant 0 : index
    %8 = vector.load %arg4[%c0_6, %c0_7] : memref<16x8xf32, #tpu.memory_space<vmem>>, vector<16x8xf32>
    %cst_8 = arith.constant dense<0.000000e+00> : vector<1024x8xf32>
    %9 = tpu.matmul %7, %8, %cst_8 {dimension_numbers = #tpu.dot_dimension_numbers<[1], [0], [0], [1], [0, 0, 1, 1], [], []>} : vector<1024x16xf32>, vector<16x8xf32>, vector<1024x8xf32> -> vector<1024x8xf32>
    %c0_9 = arith.constant 0 : index
    %c0_10 = arith.constant 0 : index
    %10 = vector.load %arg5[%c0_9, %c0_10] : memref<1x8xf32, #tpu.memory_space<vmem>>, vector<1x8xf32>
    %11 = vector.broadcast %10 : vector<1x8xf32> to vector<1024x8xf32>
    %12 = arith.addf %9, %11 : vector<1024x8xf32>
    %c0_11 = arith.constant 0 : index
    %c0_12 = arith.constant 0 : index
    %13 = vector.load %arg6[%c0_11, %c0_12] : memref<1024x8xf32, #tpu.memory_space<vmem>>, vector<1024x8xf32>
    tpu.vector_store %arg6[%c0_11, %c0_12], %12 {strides = array<i32>} : memref<1024x8xf32, #tpu.memory_space<vmem>>, vector<1024x8xf32>,
    return
  }
  func.func @transform_0(%arg0: i32) -> (i32, i32) {
    %c0_i32 = arith.constant 0 : i32
    %c0_i32_0 = arith.constant 0 : i32
    return %arg0, %c0_i32 : i32, i32
  }
  func.func @transform_1(%arg0: i32) -> (i32, i32) {
    %c0_i32 = arith.constant 0 : i32
    %c0_i32_0 = arith.constant 0 : i32
    %c0_i32_1 = arith.constant 0 : i32
    return %c0_i32, %c0_i32_0 : i32, i32
  }
  func.func @transform_2(%arg0: i32) -> (i32, i32) {
    %c0_i32 = arith.constant 0 : i32
    %c0_i32_0 = arith.constant 0 : i32
    %c0_i32_1 = arith.constant 0 : i32
    return %c0_i32, %c0_i32_0 : i32, i32
  }
  func.func @transform_3(%arg0: i32) -> (i32, i32) {
    %c0_i32 = arith.constant 0 : i32
    %c0_i32_0 = arith.constant 0 : i32
    %c0_i32_1 = arith.constant 0 : i32
    return %c0_i32, %c0_i32_0 : i32, i32
  }
  func.func @transform_4(%arg0: i32) -> (i32, i32) {
    %c0_i32 = arith.constant 0 : i32
    %c0_i32_0 = arith.constant 0 : i32
    %c0_i32_1 = arith.constant 0 : i32
    return %c0_i32, %c0_i32_0 : i32, i32
  }
  func.func @transform_5(%arg0: i32) -> (i32, i32) {
    %c0_i32 = arith.constant 0 : i32
    %c0_i32_0 = arith.constant 0 : i32
    return %arg0, %c0_i32 : i32, i32
  }
}

</mosaic_0001>

<bundles_post_ra>
// kernel: tpu_custom_call.1
= control target key start
LH: loop header
LB: loop body
LE: loop exit
PB: predicated region body
PF: predicated region fallthrough
CT: control target
= control target key end

     0   :  { %s3834_s18 = smov 0   ;;  %s4782_s0 = inlined_call_operand.vmem [shape: f32[2048,8], index: 0, kind: input, shape index: {}]   ;;  %s4783_s1 = inlined_call_operand.vmem [shape: f32[8,16], index: 1, kind: input, shape index: {}]   ;;  %s4784_s2 = inlined_call_operand.vmem [shape: f32[1,16], index: 2, kind: input, shape index: {}]   ;;  %s4785_s3 = inlined_call_operand.vmem [shape: f32[16,8], index: 3, kind: input, shape index: {}]   ;;  %s4786_s4 = inlined_call_operand.vmem [shape: f32[1,8], index: 4, kind: input, shape index: {}]   ;;  %s4787_s5 = inlined_call_operand.vmem [shape: f32[2048,8], index: 5, kind: output, shape index: {}]  }
   0x1 LB: > { %s2865_s19 = sadd.s32 4294967295, %s3802_s18   ;;  %p2869_p0 = scmp.ge.s32.totalorder %s3802_s18, 1  ;;  %s3802_s18 = sphi %s3834_s18, %s15_s18  }
   0x2   : > { %p188_p1 = scmp.lt.s32.totalorder %s3802_s18, 3 }
   0x4   : > { %p189_p2 = pnand %p2869_p0, %p188_p1 }
   0x5   : > { %v356_v0 = vld [vmem:[%s4783_s1] sm:$0xff] (!%p189_p2)  ;;  %s2870_s22 = sshll.u32 (!%p189_p2), %s2865_s19, 7  ;;  %vm364_vm0 = vcmask (!%p189_p2), 64512   ;;  %v1583_v47 = vld [vmem:[%s4785_s3 + $0x8] sm:$0xff] (!%p189_p2)  ;;  %vm1591_vm1 = vcmask (!%p189_p2), 130048  }
   0x6   : > { %192 = sbr.rel (%p189_p2) target bundleno = 704 (0x2c0), region = 40  ;;  %3393 = vmatprep.subr.mxu0 (!%p189_p2), %v356_v0  ;;  %p217_p3 = scmp.lt.s32.totalorder (!%p189_p2), %s2870_s22, 255  ;;  %v1582_v46 = vld [vmem:[%s4785_s3] sm:$0xff] (!%p189_p2) }
   0x7   : > { %3394 = vmatpush3.msra.mxu0 (!%p189_p2), %v356_v0  ;;  %v3783_v49 = vpack.c.bf16 (!%p189_p2), %v1583_v47, %v1582_v46  ;;  %v4077_v47 = vld [vmem:[%s4784_s2] ss:$0 sm:$0xff] (!%p189_p2) }
   0x9   : > { %3784 = vmatprep.subr.bf16.mxu1 (!%p189_p2), %v3783_v49 }
   0xa   : > { %3786 = vmatpush3.bf16.msra.mxu1 (!%p189_p2), %v3783_v49 }
   0xd   : > { %s4789_s22 = smov (!%p217_p3, %s2870_s22), 255 }
   0xe   : > { %s2871_s23 = sshll.u32 %s4789_s22, 3 }
   0xf   : > { %s3853_s26 = scalar_lea.vmem %s4782_s0, %s2871_s23  ;;  %s4347_s12 = scalar_lea.vmem %s4787_s5, %s2871_s23 }
  0x10   : > { %v228_v1 = vld [vmem:[%s3853_s26] sm:$0xff]  ;;  %v229_v2 = vld [vmem:[%s3853_s26 + $0x8] sm:$0xff]  ;;  %v230_v3 = vld [vmem:[%s3853_s26 + $0x10] sm:$0xff] }
  0x11   : > { %3395 = vmatprep.mubr.msk.f32.mxu0 %vm364_vm0, %v228_v1  ;;  %v231_v4 = vld [vmem:[%s3853_s26 + $0x18] sm:$0xff]  ;;  %v232_v5 = vld [vmem:[%s3853_s26 + $0x20] sm:$0xff]  ;;  %v233_v6 = vld [vmem:[%s3853_s26 + $0x28] sm:$0xff] }
  0x12   : > { %3396 = vmatmul.mubr.msk.f32.vlgmr.msra.gmra.mrb[0].mxu0 %vm364_vm0, %v229_v2  ;;  %v234_v7 = vld [vmem:[%s3853_s26 + $0x30] sm:$0xff]  ;;  %v235_v8 = vld [vmem:[%s3853_s26 + $0x38] sm:$0xff]  ;;  %v236_v9 = vld [vmem:[%s3853_s26 + $0x40] sm:$0xff] }
  0x13   : > { %3398 = vmatprep.mubr.msk.f32.mxu0 %vm364_vm0, %v230_v3  ;;  %v237_v10 = vld [vmem:[%s3853_s26 + $0x48] sm:$0xff]  ;;  %v238_v11 = vld [vmem:[%s3853_s26 + $0x50] sm:$0xff]  ;;  %v239_v12 = vld [vmem:[%s3853_s26 + $0x58] sm:$0xff] }
  0x14   : > { %v240_v13 = vld [vmem:[%s3853_s26 + $0x60] sm:$0xff]  ;;  %v241_v14 = vld [vmem:[%s3853_s26 + $0x68] sm:$0xff]  ;;  %v242_v15 = vld [vmem:[%s3853_s26 + $0x70] sm:$0xff] }
  0x15   : > { %v243_v16 = vld [vmem:[%s3853_s26 + $0x78] sm:$0xff]  ;;  %v244_v17 = vld [vmem:[%s3853_s26 + $0x80] sm:$0xff]  ;;  %v245_v18 = vld [vmem:[%s3853_s26 + $0x88] sm:$0xff] }
  0x16   : > { %3399 = vmatmul.mubr.msk.f32.gmra.mrb[2].mxu0 %vm364_vm0, %v231_v4  ;;  %v246_v19 = vld [vmem:[%s3853_s26 + $0x90] sm:$0xff]  ;;  %v247_v20 = vld [vmem:[%s3853_s26 + $0x98] sm:$0xff]  ;;  %v248_v21 = vld [vmem:[%s3853_s26 + $0xa0] sm:$0xff] }
  0x17   : > { %3401 = vmatprep.mubr.msk.f32.mxu0 %vm364_vm0, %v232_v5  ;;  %v249_v22 = vld [vmem:[%s3853_s26 + $0xa8] sm:$0xff]  ;;  %v250_v23 = vld [vmem:[%s3853_s26 + $0xb0] sm:$0xff]  ;;  %v251_v24 = vld [vmem:[%s3853_s26 + $0xb8] sm:$0xff] }
  0x18   : > { %v252_v25 = vld [vmem:[%s3853_s26 + $0xc0] sm:$0xff]  ;;  %v253_v26 = vld [vmem:[%s3853_s26 + $0xc8] sm:$0xff]  ;;  %v254_v27 = vld [vmem:[%s3853_s26 + $0xd0] sm:$0xff] }
  0x19   : > { %v255_v28 = vld [vmem:[%s3853_s26 + $0xd8] sm:$0xff]  ;;  %v256_v29 = vld [vmem:[%s3853_s26 + $0xe0] sm:$0xff]  ;;  %v257_v30 = vld [vmem:[%s3853_s26 + $0xe8] sm:$0xff] }
  0x1a   : > { %3402 = vmatmul.mubr.msk.f32.gmra.mrb[4].mxu0 %vm364_vm0, %v233_v6  ;;  %v258_v31 = vld [vmem:[%s3853_s26 + $0xf0] sm:$0xff]  ;;  %v259_v32 = vld [vmem:[%s3853_s26 + $0xf8] sm:$0xff]  ;;  %v260_v33 = vld [vmem:[%s3853_s26 + $0x100] sm:$0xff] }
  0x1b   : > { %3404 = vmatprep.mubr.msk.f32.mxu0 %vm364_vm0, %v234_v7  ;;  %v261_v34 = vld [vmem:[%s3853_s26 + $0x108] sm:$0xff]  ;;  %v262_v35 = vld [vmem:[%s3853_s26 + $0x110] sm:$0xff]  ;;  %v263_v36 = vld [vmem:[%s3853_s26 + $0x118] sm:$0xff] }
  0x1c   : > { %v264_v37 = vld [vmem:[%s3853_s26 + $0x120] sm:$0xff]  ;;  %v265_v38 = vld [vmem:[%s3853_s26 + $0x128] sm:$0xff]  ;;  %v266_v39 = vld [vmem:[%s3853_s26 + $0x130] sm:$0xff] }
  0x1d   : > { %v267_v40 = vld [vmem:[%s3853_s26 + $0x138] sm:$0xff]  ;;  %v268_v41 = vld [vmem:[%s3853_s26 + $0x140] sm:$0xff]  ;;  %v269_v42 = vld [vmem:[%s3853_s26 + $0x148] sm:$0xff] }
  0x1e   : > { %3405 = vmatmul.mubr.msk.f32.gmra.mrb[6].mxu0 %vm364_vm0, %v235_v8  ;;  %v270_v43 = vld [vmem:[%s3853_s26 + $0x150] sm:$0xff]  ;;  %v271_v44 = vld [vmem:[%s3853_s26 + $0x158] sm:$0xff]  ;;  %v272_v45 = vld [vmem:[%s3853_s26 + $0x160] sm:$0xff] }
  0x1f   : > { %3407 = vmatprep.mubr.msk.f32.mxu0 %vm364_vm0, %v236_v9  ;;  %v273_v48 = vld [vmem:[%s3853_s26 + $0x168] sm:$0xff]  ;;  %v274_v50 = vld [vmem:[%s3853_s26 + $0x170] sm:$0xff]  ;;  %v275_v51 = vld [vmem:[%s3853_s26 + $0x178] sm:$0xff] }
  0x20   : > { %v276_v52 = vld [vmem:[%s3853_s26 + $0x180] sm:$0xff]  ;;  %v277_v53 = vld [vmem:[%s3853_s26 + $0x188] sm:$0xff]  ;;  %v278_v54 = vld [vmem:[%s3853_s26 + $0x190] sm:$0xff] }
  0x21   : > { %v279_v55 = vld [vmem:[%s3853_s26 + $0x198] sm:$0xff]  ;;  %v280_v56 = vld [vmem:[%s3853_s26 + $0x1a0] sm:$0xff]  ;;  %v281_v57 = vld [vmem:[%s3853_s26 + $0x1a8] sm:$0xff] }
  0x22   : > { %3408 = vmatmul.mubr.msk.f32.gmra.mrb[8].mxu0 %vm364_vm0, %v237_v10  ;;  %v282_v58 = vld [vmem:[%s3853_s26 + $0x1b0] sm:$0xff]  ;;  %v283_v59 = vld [vmem:[%s3853_s26 + $0x1b8] sm:$0xff]  ;;  %v284_v60 = vld [vmem:[%s3853_s26 + $0x1c0] sm:$0xff] }
  0x23   : > { %3410 = vmatprep.mubr.msk.f32.mxu0 %vm364_vm0, %v238_v11  ;;  %v285_v61 = vld [vmem:[%s3853_s26 + $0x1c8] sm:$0xff]  ;;  %v286_v62 = vld [vmem:[%s3853_s26 + $0x1d0] sm:$0xff]  ;;  %v287_v63 = vld [vmem:[%s3853_s26 + $0x1d8] sm:$0xff] }
  0x24   : > { %v288_v0 = vld [vmem:[%s3853_s26 + $0x1e0] sm:$0xff]  ;;  %v289_v1 = vld [vmem:[%s3853_s26 + $0x1e8] sm:$0xff]  ;;  %v290_v2 = vld [vmem:[%s3853_s26 + $0x1f0] sm:$0xff] }
  0x25   : > { %v291_v3 = vld [vmem:[%s3853_s26 + $0x1f8] sm:$0xff]  ;;  %v292_v4 = vld [vmem:[%s3853_s26 + $0x200] sm:$0xff]  ;;  %v293_v5 = vld [vmem:[%s3853_s26 + $0x208] sm:$0xff] }
  0x26   : > { %3411 = vmatmul.mubr.msk.f32.gmra.mrb[10].mxu0 %vm364_vm0, %v239_v12  ;;  %v294_v6 = vld [vmem:[%s3853_s26 + $0x210] sm:$0xff]  ;;  %v295_v7 = vld [vmem:[%s3853_s26 + $0x218] sm:$0xff]  ;;  %v296_v8 = vld [vmem:[%s3853_s26 + $0x220] sm:$0xff] }
  0x27   : > { %3413 = vmatprep.mubr.msk.f32.mxu0 %vm364_vm0, %v240_v13  ;;  %v297_v9 = vld [vmem:[%s3853_s26 + $0x228] sm:$0xff]  ;;  %v298_v10 = vld [vmem:[%s3853_s26 + $0x230] sm:$0xff]  ;;  %v299_v11 = vld [vmem:[%s3853_s26 + $0x238] sm:$0xff] }
  0x28   : > { %v300_v12 = vld [vmem:[%s3853_s26 + $0x240] sm:$0xff]  ;;  %v301_v13 = vld [vmem:[%s3853_s26 + $0x248] sm:$0xff]  ;;  %v334_v46 = vld [vmem:[%s3853_s26 + $0x350] sm:$0xff] }
  0x29   : > { %v336_v49 = vld [vmem:[%s3853_s26 + $0x360] sm:$0xff] }
  0x2a   : > { %3414 = vmatmul.mubr.msk.f32.gmra.mrb[12].mxu0 %vm364_vm0, %v241_v14  ;;  %v302_v14 = vld [vmem:[%s3853_s26 + $0x250] sm:$0xff] }
  0x2b   : > { %3416 = vmatprep.mubr.msk.f32.mxu0 %vm364_vm0, %v242_v15  ;;  %v303_v15 = vld [vmem:[%s3853_s26 + $0x258] sm:$0xff] }
  0x2e   : > { %3417 = vmatmul.mubr.msk.f32.gmra.mrb[14].mxu0 %vm364_vm0, %v243_v16  ;;  %v304_v16 = vld [vmem:[%s3853_s26 + $0x260] sm:$0xff] }
  0x2f   : > { %3419 = vmatprep.mubr.msk.f32.mxu0 %vm364_vm0, %v244_v17  ;;  %v305_v17 = vld [vmem:[%s3853_s26 + $0x268] sm:$0xff] }
  0x32   : > { %3420 = vmatmul.mubr.msk.f32.gmra.mrb[16].mxu0 %vm364_vm0, %v245_v18  ;;  %v306_v18 = vld [vmem:[%s3853_s26 + $0x270] sm:$0xff] }
  0x33   : > { %3422 = vmatprep.mubr.msk.f32.mxu0 %vm364_vm0, %v246_v19  ;;  %v307_v19 = vld [vmem:[%s3853_s26 + $0x278] sm:$0xff] }
  0x36   : > { %3423 = vmatmul.mubr.msk.f32.gmra.mrb[18].mxu0 %vm364_vm0, %v247_v20  ;;  %v308_v20 = vld [vmem:[%s3853_s26 + $0x280] sm:$0xff] }
  0x37   : > { %3425 = vmatprep.mubr.msk.f32.mxu0 %vm364_vm0, %v248_v21  ;;  %v309_v21 = vld [vmem:[%s3853_s26 + $0x288] sm:$0xff] }
  0x3a   : > { %3426 = vmatmul.mubr.msk.f32.gmra.mrb[20].mxu0 %vm364_vm0, %v249_v22  ;;  %v310_v22 = vld [vmem:[%s3853_s26 + $0x290] sm:$0xff] }
  0x3b   : > { %3428 = vmatprep.mubr.msk.f32.mxu0 %vm364_vm0, %v250_v23  ;;  %v311_v23 = vld [vmem:[%s3853_s26 + $0x298] sm:$0xff] }
  0x3e   : > { %3429 = vmatmul.mubr.msk.f32.gmra.mrb[22].mxu0 %vm364_vm0, %v251_v24  ;;  %v312_v24 = vld [vmem:[%s3853_s26 + $0x2a0] sm:$0xff] }
  0x3f   : > { %3431 = vmatprep.mubr.msk.f32.mxu0 %vm364_vm0, %v252_v25  ;;  %v313_v25 = vld [vmem:[%s3853_s26 + $0x2a8] sm:$0xff] }
  0x42   : > { %3432 = vmatmul.mubr.msk.f32.gmra.mrb[24].mxu0 %vm364_vm0, %v253_v26  ;;  %v314_v26 = vld [vmem:[%s3853_s26 + $0x2b0] sm:$0xff] }
  0x43   : > { %3434 = vmatprep.mubr.msk.f32.mxu0 %vm364_vm0, %v254_v27  ;;  %v315_v27 = vld [vmem:[%s3853_s26 + $0x2b8] sm:$0xff] }
  0x46   : > { %3435 = vmatmul.mubr.msk.f32.gmra.mrb[26].mxu0 %vm364_vm0, %v255_v28  ;;  %v316_v28 = vld [vmem:[%s3853_s26 + $0x2c0] sm:$0xff] }
  0x47   : > { %3437 = vmatprep.mubr.msk.f32.mxu0 %vm364_vm0, %v256_v29  ;;  %v317_v29 = vld [vmem:[%s3853_s26 + $0x2c8] sm:$0xff] }
  0x4a   : > { %3438 = vmatmul.mubr.msk.f32.gmra.mrb[28].mxu0 %vm364_vm0, %v257_v30  ;;  %v318_v30 = vld [vmem:[%s3853_s26 + $0x2d0] sm:$0xff] }
  0x4b   : > { %3440 = vmatprep.mubr.msk.f32.mxu0 %vm364_vm0, %v258_v31  ;;  %v319_v31 = vld [vmem:[%s3853_s26 + $0x2d8] sm:$0xff] }
  0x4e   : > { %3441 = vmatmul.mubr.msk.f32.gmra.mrb[30].mxu0 %vm364_vm0, %v259_v32  ;;  %v320_v32 = vld [vmem:[%s3853_s26 + $0x2e0] sm:$0xff] }
  0x4f   : > { %3443 = vmatprep.mubr.msk.f32.mxu0 %vm364_vm0, %v260_v33  ;;  %v321_v33 = vld [vmem:[%s3853_s26 + $0x2e8] sm:$0xff] }
  0x52   : > { %3444 = vmatmul.mubr.msk.f32.gmra.mrb[32].mxu0 %vm364_vm0, %v261_v34  ;;  %v322_v34 = vld [vmem:[%s3853_s26 + $0x2f0] sm:$0xff] }
  0x53   : > { %3446 = vmatprep.mubr.msk.f32.mxu0 %vm364_vm0, %v262_v35  ;;  %v323_v35 = vld [vmem:[%s3853_s26 + $0x2f8] sm:$0xff] }
  0x56   : > { %3447 = vmatmul.mubr.msk.f32.gmra.mrb[34].mxu0 %vm364_vm0, %v263_v36  ;;  %v324_v36 = vld [vmem:[%s3853_s26 + $0x300] sm:$0xff] }
  0x57   : > { %3449 = vmatprep.mubr.msk.f32.mxu0 %vm364_vm0, %v264_v37  ;;  %v325_v37 = vld [vmem:[%s3853_s26 + $0x308] sm:$0xff] }
  0x5a   : > { %3450 = vmatmul.mubr.msk.f32.gmra.mrb[36].mxu0 %vm364_vm0, %v265_v38  ;;  %v326_v38 = vld [vmem:[%s3853_s26 + $0x310] sm:$0xff] }
  0x5b   : > { %3452 = vmatprep.mubr.msk.f32.mxu0 %vm364_vm0, %v266_v39  ;;  %v327_v39 = vld [vmem:[%s3853_s26 + $0x318] sm:$0xff] }
  0x5e   : > { %3453 = vmatmul.mubr.msk.f32.gmra.mrb[38].mxu0 %vm364_vm0, %v267_v40  ;;  %v328_v40 = vld [vmem:[%s3853_s26 + $0x320] sm:$0xff] }
  0x5f   : > { %3455 = vmatprep.mubr.msk.f32.mxu0 %vm364_vm0, %v268_v41  ;;  %v329_v41 = vld [vmem:[%s3853_s26 + $0x328] sm:$0xff] }
  0x62   : > { %3456 = vmatmul.mubr.msk.f32.gmra.mrb[40].mxu0 %vm364_vm0, %v269_v42  ;;  %v330_v42 = vld [vmem:[%s3853_s26 + $0x330] sm:$0xff] }
  0x63   : > { %3458 = vmatprep.mubr.msk.f32.mxu0 %vm364_vm0, %v270_v43  ;;  %v331_v43 = vld [vmem:[%s3853_s26 + $0x338] sm:$0xff] }
  0x66   : > { %3459 = vmatmul.mubr.msk.f32.gmra.mrb[42].mxu0 %vm364_vm0, %v271_v44  ;;  %v332_v44 = vld [vmem:[%s3853_s26 + $0x340] sm:$0xff] }
  0x67   : > { %3461 = vmatprep.mubr.msk.f32.mxu0 %vm364_vm0, %v272_v45  ;;  %v333_v45 = vld [vmem:[%s3853_s26 + $0x348] sm:$0xff] }
  0x6a   : > { %3462 = vmatmul.mubr.msk.f32.gmra.mrb[44].mxu0 %vm364_vm0, %v273_v48  ;;  %v335_v48 = vld [vmem:[%s3853_s26 + $0x358] sm:$0xff] }
  0x6b   : > { %3464 = vmatprep.mubr.msk.f32.mxu0 %vm364_vm0, %v274_v50 }
  0x6e   : > { %3465 = vmatmul.mubr.msk.f32.gmra.mrb[46].mxu0 %vm364_vm0, %v275_v51 }
  0x6f   : > { %3467 = vmatprep.mubr.msk.f32.mxu0 %vm364_vm0, %v276_v52 }
  0x72   : > { %3468 = vmatmul.mubr.msk.f32.gmra.mrb[48].mxu0 %vm364_vm0, %v277_v53 }
  0x73   : > { %3470 = vmatprep.mubr.msk.f32.mxu0 %vm364_vm0, %v278_v54  ;;  %v337_v54 = vld [vmem:[%s3853_s26 + $0x368] sm:$0xff] }
  0x76   : > { %3471 = vmatmul.mubr.msk.f32.gmra.mrb[50].mxu0 %vm364_vm0, %v279_v55  ;;  %v338_v55 = vld [vmem:[%s3853_s26 + $0x370] sm:$0xff] }
  0x77   : > { %3473 = vmatprep.mubr.msk.f32.mxu0 %vm364_vm0, %v280_v56 }
  0x7a   : > { %3474 = vmatmul.mubr.msk.f32.gmra.mrb[52].mxu0 %vm364_vm0, %v281_v57 }
  0x7b   : > { %3476 = vmatprep.mubr.msk.f32.mxu0 %vm364_vm0, %v282_v58 }
  0x7e   : > { %3477 = vmatmul.mubr.msk.f32.gmra.mrb[54].mxu0 %vm364_vm0, %v283_v59 }
  0x7f   : > { %3479 = vmatprep.mubr.msk.f32.mxu0 %vm364_vm0, %v284_v60 }
  0x82   : > { %3480 = vmatmul.mubr.msk.f32.gmra.mrb[56].mxu0 %vm364_vm0, %v285_v61 }
  0x83   : > { %3482 = vmatprep.mubr.msk.f32.mxu0 %vm364_vm0, %v286_v62  ;;  %v339_v62 = vld [vmem:[%s3853_s26 + $0x378] sm:$0xff] }
  0x86   : > { %3483 = vmatmul.mubr.msk.f32.gmra.mrb[58].mxu0 %vm364_vm0, %v287_v63  ;;  %v340_v63 = vld [vmem:[%s3853_s26 + $0x380] sm:$0xff] }
  0x87   : > { %3485 = vmatprep.mubr.msk.f32.mxu0 %vm364_vm0, %v288_v0 }
  0x8a   : > { %3486 = vmatmul.mubr.msk.f32.gmra.mrb[60].mxu0 %vm364_vm0, %v289_v1 }
  0x8b   : > { %3488 = vmatprep.mubr.msk.f32.mxu0 %vm364_vm0, %v290_v2 }
  0x8e   : > { %3489 = vmatmul.mubr.msk.f32.gmra.mrb[62].mxu0 %vm364_vm0, %v291_v3 }
  0x8f   : > { %3491 = vmatprep.mubr.msk.f32.mxu0 %vm364_vm0, %v292_v4 }
  0x92   : > { %3492 = vmatmul.mubr.msk.f32.gmra.mrb[64].mxu0 %vm364_vm0, %v293_v5 }
  0x93   : > { %3494 = vmatprep.mubr.msk.f32.mxu0 %vm364_vm0, %v294_v6  ;;  %v341_v6 = vld [vmem:[%s3853_s26 + $0x388] sm:$0xff] }
  0x96   : > { %3495 = vmatmul.mubr.msk.f32.gmra.mrb[66].mxu0 %vm364_vm0, %v295_v7  ;;  %v342_v7 = vld [vmem:[%s3853_s26 + $0x390] sm:$0xff] }
  0x97   : > { %3497 = vmatprep.mubr.msk.f32.mxu0 %vm364_vm0, %v296_v8 }
  0x9a   : > { %3498 = vmatmul.mubr.msk.f32.gmra.mrb[68].mxu0 %vm364_vm0, %v297_v9 }
  0x9b   : > { %3500 = vmatprep.mubr.msk.f32.mxu0 %vm364_vm0, %v298_v10 }
  0x9e   : > { %3501 = vmatmul.mubr.msk.f32.gmra.mrb[70].mxu0 %vm364_vm0, %v299_v11 }
  0x9f   : > { %3503 = vmatprep.mubr.msk.f32.mxu0 %vm364_vm0, %v300_v12 }
  0xa2   : > { %3504 = vmatmul.mubr.msk.f32.gmra.mrb[72].mxu0 %vm364_vm0, %v301_v13 }
  0xa3   : > { %3506 = vmatprep.mubr.msk.f32.mxu0 %vm364_vm0, %v302_v14  ;;  %v343_v14 = vld [vmem:[%s3853_s26 + $0x398] sm:$0xff] }
  0xa6   : > { %3507 = vmatmul.mubr.msk.f32.gmra.mrb[74].mxu0 %vm364_vm0, %v303_v15  ;;  %v344_v15 = vld [vmem:[%s3853_s26 + $0x3a0] sm:$0xff] }
  0xa7   : > { %3509 = vmatprep.mubr.msk.f32.mxu0 %vm364_vm0, %v304_v16 }
  0xaa   : > { %3510 = vmatmul.mubr.msk.f32.gmra.mrb[76].mxu0 %vm364_vm0, %v305_v17 }
  0xab   : > { %3512 = vmatprep.mubr.msk.f32.mxu0 %vm364_vm0, %v306_v18 }
  0xae   : > { %3513 = vmatmul.mubr.msk.f32.gmra.mrb[78].mxu0 %vm364_vm0, %v307_v19 }
  0xaf   : > { %3515 = vmatprep.mubr.msk.f32.mxu0 %vm364_vm0, %v308_v20 }
  0xb2   : > { %3516 = vmatmul.mubr.msk.f32.gmra.mrb[80].mxu0 %vm364_vm0, %v309_v21 }
  0xb3   : > { %3518 = vmatprep.mubr.msk.f32.mxu0 %vm364_vm0, %v310_v22  ;;  %v345_v22 = vld [vmem:[%s3853_s26 + $0x3a8] sm:$0xff] }
  0xb6   : > { %3519 = vmatmul.mubr.msk.f32.gmra.mrb[82].mxu0 %vm364_vm0, %v311_v23  ;;  %v346_v23 = vld [vmem:[%s3853_s26 + $0x3b0] sm:$0xff] }
  0xb7   : > { %3521 = vmatprep.mubr.msk.f32.mxu0 %vm364_vm0, %v312_v24 }
  0xba   : > { %3522 = vmatmul.mubr.msk.f32.gmra.mrb[84].mxu0 %vm364_vm0, %v313_v25 }
  0xbb   : > { %3524 = vmatprep.mubr.msk.f32.mxu0 %vm364_vm0, %v314_v26 }
  0xbe   : > { %3525 = vmatmul.mubr.msk.f32.gmra.mrb[86].mxu0 %vm364_vm0, %v315_v27 }
  0xbf   : > { %3527 = vmatprep.mubr.msk.f32.mxu0 %vm364_vm0, %v316_v28 }
  0xc2   : > { %3528 = vmatmul.mubr.msk.f32.gmra.mrb[88].mxu0 %vm364_vm0, %v317_v29 }
  0xc3   : > { %3530 = vmatprep.mubr.msk.f32.mxu0 %vm364_vm0, %v318_v30  ;;  %v347_v30 = vld [vmem:[%s3853_s26 + $0x3b8] sm:$0xff] }
  0xc6   : > { %3531 = vmatmul.mubr.msk.f32.gmra.mrb[90].mxu0 %vm364_vm0, %v319_v31  ;;  %v348_v31 = vld [vmem:[%s3853_s26 + $0x3c0] sm:$0xff] }
  0xc7   : > { %3533 = vmatprep.mubr.msk.f32.mxu0 %vm364_vm0, %v320_v32 }
  0xca   : > { %3534 = vmatmul.mubr.msk.f32.gmra.mrb[92].mxu0 %vm364_vm0, %v321_v33 }
  0xcb   : > { %3536 = vmatprep.mubr.msk.f32.mxu0 %vm364_vm0, %v322_v34 }
  0xce   : > { %3537 = vmatmul.mubr.msk.f32.gmra.mrb[94].mxu0 %vm364_vm0, %v323_v35 }
  0xcf   : > { %3539 = vmatprep.mubr.msk.f32.mxu0 %vm364_vm0, %v324_v36 }
  0xd2   : > { %3540 = vmatmul.mubr.msk.f32.gmra.mrb[96].mxu0 %vm364_vm0, %v325_v37 }
  0xd3   : > { %3542 = vmatprep.mubr.msk.f32.mxu0 %vm364_vm0, %v326_v38  ;;  %v349_v38 = vld [vmem:[%s3853_s26 + $0x3c8] sm:$0xff] }
  0xd6   : > { %3543 = vmatmul.mubr.msk.f32.gmra.mrb[98].mxu0 %vm364_vm0, %v327_v39  ;;  %v350_v39 = vld [vmem:[%s3853_s26 + $0x3d0] sm:$0xff] }
  0xd7   : > { %3545 = vmatprep.mubr.msk.f32.mxu0 %vm364_vm0, %v328_v40 }
  0xda   : > { %3546 = vmatmul.mubr.msk.f32.gmra.mrb[100].mxu0 %vm364_vm0, %v329_v41 }
  0xdb   : > { %3548 = vmatprep.mubr.msk.f32.mxu0 %vm364_vm0, %v330_v42 }
  0xde   : > { %3549 = vmatmul.mubr.msk.f32.gmra.mrb[102].mxu0 %vm364_vm0, %v331_v43 }
  0xdf   : > { %3551 = vmatprep.mubr.msk.f32.mxu0 %vm364_vm0, %v332_v44 }
  0xe2   : > { %3552 = vmatmul.mubr.msk.f32.gmra.mrb[104].mxu0 %vm364_vm0, %v333_v45 }
  0xe3   : > { %3554 = vmatprep.mubr.msk.f32.mxu0 %vm364_vm0, %v334_v46  ;;  %v351_v46 = vld [vmem:[%s3853_s26 + $0x3d8] sm:$0xff] }
  0xe5   : > { %v3397_v50 = vpop.f32.mrb[0].mxu0 }
  0xe6   : > { %v821_v51 = vadd.f32 %v3397_v50, %v4077_v47  ;;  %v815_v52 = vpop.f32.mrb[1].mxu0  ;;  %3555 = vmatmul.mubr.msk.f32.gmra.mrb[106].mxu0 %vm364_vm0, %v335_v48  ;;  %v352_v48 = vld [vmem:[%s3853_s26 + $0x3e0] sm:$0xff] }
  0xe7   : > { %v816_v53 = vadd.f32 %v4077_v47, %v815_v52  ;;  %3557 = vmatprep.mubr.msk.f32.mxu0 %vm364_vm0, %v336_v49 }
  0xe8   : > { %v1455_v58 = vmax.f32 %v821_v51, 0.0 }
  0xe9   : > { %v1454_v56 = vmax.f32 %v816_v53, 0.0  ;;  %v3400_v57 = vpop.f32.mrb[2].mxu0 }
  0xea   : > { %v831_v59 = vadd.f32 %v3400_v57, %v4077_v47  ;;  %v825_v60 = vpop.f32.mrb[3].mxu0  ;;  %3558 = vmatmul.mubr.msk.f32.gmra.mrb[108].mxu0 %vm364_vm0, %v337_v54 }
  0xeb   : > { %v826_v61 = vadd.f32 %v4077_v47, %v825_v60  ;;  %3591 = vmatprep.mubr.msk.f32.mxu1 %vm1591_vm1, %v1454_v56  ;;  %3560 = vmatprep.mubr.msk.f32.mxu0 %vm364_vm0, %v338_v55  ;;  %v353_v55 = vld [vmem:[%s3853_s26 + $0x3e8] sm:$0xff]  ;;  %v354_v56 = vld [vmem:[%s3853_s26 + $0x3f0] sm:$0xff] }
  0xec   : > { %3592 = vmatmul.mubr.msk.f32.vlgmr.msra.gmra.mrb[0].mxu1 %vm1591_vm1, %v1455_v58  ;;  %v1457_v2 = vmax.f32 %v831_v59, 0.0 }
  0xed   : > { %v1456_v0 = vmax.f32 %v826_v61, 0.0  ;;  %v3403_v1 = vpop.f32.mrb[4].mxu0 }
  0xee   : > { %v841_v3 = vadd.f32 %v3403_v1, %v4077_v47  ;;  %v835_v4 = vpop.f32.mrb[5].mxu0  ;;  %3561 = vmatmul.mubr.msk.f32.gmra.mrb[110].mxu0 %vm364_vm0, %v339_v62 }
  0xef   : > { %v836_v5 = vadd.f32 %v4077_v47, %v835_v4  ;;  %3594 = vmatprep.mubr.msk.f32.mxu1 %vm1591_vm1, %v1456_v0  ;;  %3563 = vmatprep.mubr.msk.f32.mxu0 %vm364_vm0, %v340_v63  ;;  %v355_v63 = vld [vmem:[%s3853_s26 + $0x3f8] sm:$0xff] }
  0xf0   : > { %3595 = vmatmul.mubr.msk.f32.gmra.mrb[2].mxu1 %vm1591_vm1, %v1457_v2  ;;  %v1459_v10 = vmax.f32 %v841_v3, 0.0 }
  0xf1   : > { %v1458_v8 = vmax.f32 %v836_v5, 0.0  ;;  %v3406_v9 = vpop.f32.mrb[6].mxu0 }
  0xf2   : > { %v851_v11 = vadd.f32 %v3406_v9, %v4077_v47  ;;  %v845_v12 = vpop.f32.mrb[7].mxu0  ;;  %3564 = vmatmul.mubr.msk.f32.gmra.mrb[112].mxu0 %vm364_vm0, %v341_v6 }
  0xf3   : > { %v846_v13 = vadd.f32 %v4077_v47, %v845_v12  ;;  %3597 = vmatprep.mubr.msk.f32.mxu1 %vm1591_vm1, %v1458_v8  ;;  %3566 = vmatprep.mubr.msk.f32.mxu0 %vm364_vm0, %v342_v7 }
  0xf4   : > { %3598 = vmatmul.mubr.msk.f32.gmra.mrb[4].mxu1 %vm1591_vm1, %v1459_v10  ;;  %v1461_v18 = vmax.f32 %v851_v11, 0.0 }
  0xf5   : > { %v1460_v16 = vmax.f32 %v846_v13, 0.0  ;;  %v3409_v17 = vpop.f32.mrb[8].mxu0 }
  0xf6   : > { %v861_v19 = vadd.f32 %v3409_v17, %v4077_v47  ;;  %v855_v20 = vpop.f32.mrb[9].mxu0  ;;  %3567 = vmatmul.mubr.msk.f32.gmra.mrb[114].mxu0 %vm364_vm0, %v343_v14 }
  0xf7   : > { %v856_v21 = vadd.f32 %v4077_v47, %v855_v20  ;;  %3600 = vmatprep.mubr.msk.f32.mxu1 %vm1591_vm1, %v1460_v16  ;;  %3569 = vmatprep.mubr.msk.f32.mxu0 %vm364_vm0, %v344_v15 }
  0xf8   : > { %3601 = vmatmul.mubr.msk.f32.gmra.mrb[6].mxu1 %vm1591_vm1, %v1461_v18  ;;  %v1463_v26 = vmax.f32 %v861_v19, 0.0 }
  0xf9   : > { %v1462_v24 = vmax.f32 %v856_v21, 0.0  ;;  %v3412_v25 = vpop.f32.mrb[10].mxu0 }
  0xfa   : > { %v871_v27 = vadd.f32 %v3412_v25, %v4077_v47  ;;  %v865_v28 = vpop.f32.mrb[11].mxu0  ;;  %3570 = vmatmul.mubr.msk.f32.gmra.mrb[116].mxu0 %vm364_vm0, %v345_v22 }
  0xfb   : > { %v866_v29 = vadd.f32 %v4077_v47, %v865_v28  ;;  %3603 = vmatprep.mubr.msk.f32.mxu1 %vm1591_vm1, %v1462_v24  ;;  %3572 = vmatprep.mubr.msk.f32.mxu0 %vm364_vm0, %v346_v23 }
  0xfc   : > { %3604 = vmatmul.mubr.msk.f32.gmra.mrb[8].mxu1 %vm1591_vm1, %v1463_v26  ;;  %v1465_v34 = vmax.f32 %v871_v27, 0.0 }
  0xfd   : > { %v1464_v32 = vmax.f32 %v866_v29, 0.0  ;;  %v3415_v33 = vpop.f32.mrb[12].mxu0 }
  0xfe   : > { %v881_v35 = vadd.f32 %v3415_v33, %v4077_v47  ;;  %v875_v36 = vpop.f32.mrb[13].mxu0  ;;  %3573 = vmatmul.mubr.msk.f32.gmra.mrb[118].mxu0 %vm364_vm0, %v347_v30 }
  0xff   : > { %v876_v37 = vadd.f32 %v4077_v47, %v875_v36  ;;  %3606 = vmatprep.mubr.msk.f32.mxu1 %vm1591_vm1, %v1464_v32  ;;  %3575 = vmatprep.mubr.msk.f32.mxu0 %vm364_vm0, %v348_v31 }
 0x100   : > { %3607 = vmatmul.mubr.msk.f32.gmra.mrb[10].mxu1 %vm1591_vm1, %v1465_v34  ;;  %v1467_v42 = vmax.f32 %v881_v35, 0.0 }
 0x101   : > { %v1466_v40 = vmax.f32 %v876_v37, 0.0  ;;  %v3418_v41 = vpop.f32.mrb[14].mxu0 }
 0x102   : > { %v891_v43 = vadd.f32 %v3418_v41, %v4077_v47  ;;  %v885_v44 = vpop.f32.mrb[15].mxu0  ;;  %3576 = vmatmul.mubr.msk.f32.gmra.mrb[120].mxu0 %vm364_vm0, %v349_v38 }
 0x103   : > { %v886_v45 = vadd.f32 %v4077_v47, %v885_v44  ;;  %3609 = vmatprep.mubr.msk.f32.mxu1 %vm1591_vm1, %v1466_v40  ;;  %3578 = vmatprep.mubr.msk.f32.mxu0 %vm364_vm0, %v350_v39 }
 0x104   : > { %3610 = vmatmul.mubr.msk.f32.gmra.mrb[12].mxu1 %vm1591_vm1, %v1467_v42  ;;  %v1469_v51 = vmax.f32 %v891_v43, 0.0 }
 0x105   : > { %v1468_v49 = vmax.f32 %v886_v45, 0.0  ;;  %v3421_v50 = vpop.f32.mrb[16].mxu0 }
 0x106   : > { %v901_v52 = vadd.f32 %v3421_v50, %v4077_v47  ;;  %v895_v53 = vpop.f32.mrb[17].mxu0  ;;  %3579 = vmatmul.mubr.msk.f32.gmra.mrb[122].mxu0 %vm364_vm0, %v351_v46 }
 0x107   : > { %v896_v54 = vadd.f32 %v4077_v47, %v895_v53  ;;  %3612 = vmatprep.mubr.msk.f32.mxu1 %vm1591_vm1, %v1468_v49  ;;  %3581 = vmatprep.mubr.msk.f32.mxu0 %vm364_vm0, %v352_v48 }
 0x108   : > { %3613 = vmatmul.mubr.msk.f32.gmra.mrb[14].mxu1 %vm1591_vm1, %v1469_v51  ;;  %v1471_v59 = vmax.f32 %v901_v52, 0.0 }
 0x109   : > { %v1470_v57 = vmax.f32 %v896_v54, 0.0  ;;  %v3424_v58 = vpop.f32.mrb[18].mxu0 }
 0x10a   : > { %v911_v60 = vadd.f32 %v3424_v58, %v4077_v47  ;;  %v905_v61 = vpop.f32.mrb[19].mxu0  ;;  %3582 = vmatmul.mubr.msk.f32.gmra.mrb[124].mxu0 %vm364_vm0, %v353_v55 }
 0x10b   : > { %v906_v62 = vadd.f32 %v4077_v47, %v905_v61  ;;  %3615 = vmatprep.mubr.msk.f32.mxu1 %vm1591_vm1, %v1470_v57  ;;  %3584 = vmatprep.mubr.msk.f32.mxu0 %vm364_vm0, %v354_v56 }
 0x10c   : > { %3616 = vmatmul.mubr.msk.f32.gmra.mrb[16].mxu1 %vm1591_vm1, %v1471_v59  ;;  %v1473_v2 = vmax.f32 %v911_v60, 0.0 }
 0x10d   : > { %v1472_v0 = vmax.f32 %v906_v62, 0.0  ;;  %v3427_v1 = vpop.f32.mrb[20].mxu0 }
 0x10e   : > { %v921_v3 = vadd.f32 %v3427_v1, %v4077_v47  ;;  %v915_v4 = vpop.f32.mrb[21].mxu0  ;;  %3585 = vmatmul.mubr.msk.f32.gmra.mrb[126].mxu0 %vm364_vm0, %v355_v63 }
 0x10f   : > { %v916_v5 = vadd.f32 %v4077_v47, %v915_v4  ;;  %3618 = vmatprep.mubr.msk.f32.mxu1 %vm1591_vm1, %v1472_v0 }
 0x110   : > { %3619 = vmatmul.mubr.msk.f32.gmra.mrb[18].mxu1 %vm1591_vm1, %v1473_v2  ;;  %v1475_v8 = vmax.f32 %v921_v3, 0.0 }
 0x111   : > { %v1474_v6 = vmax.f32 %v916_v5, 0.0  ;;  %v3430_v7 = vpop.f32.mrb[22].mxu0 }
 0x112   : > { %v931_v9 = vadd.f32 %v3430_v7, %v4077_v47  ;;  %v925_v10 = vpop.f32.mrb[23].mxu0 }
 0x113   : > { %v926_v11 = vadd.f32 %v4077_v47, %v925_v10  ;;  %3621 = vmatprep.mubr.msk.f32.mxu1 %vm1591_vm1, %v1474_v6 }
 0x114   : > { %3622 = vmatmul.mubr.msk.f32.gmra.mrb[20].mxu1 %vm1591_vm1, %v1475_v8  ;;  %v1477_v14 = vmax.f32 %v931_v9, 0.0 }
 0x115   : > { %v1476_v12 = vmax.f32 %v926_v11, 0.0  ;;  %v3433_v13 = vpop.f32.mrb[24].mxu0 }
 0x116   : > { %v941_v15 = vadd.f32 %v3433_v13, %v4077_v47  ;;  %v935_v16 = vpop.f32.mrb[25].mxu0 }
 0x117   : > { %v936_v17 = vadd.f32 %v4077_v47, %v935_v16  ;;  %3624 = vmatprep.mubr.msk.f32.mxu1 %vm1591_vm1, %v1476_v12 }
 0x118   : > { %3625 = vmatmul.mubr.msk.f32.gmra.mrb[22].mxu1 %vm1591_vm1, %v1477_v14  ;;  %v1479_v20 = vmax.f32 %v941_v15, 0.0 }
 0x119   : > { %v1478_v18 = vmax.f32 %v936_v17, 0.0  ;;  %v3436_v19 = vpop.f32.mrb[26].mxu0 }
 0x11a   : > { %v951_v21 = vadd.f32 %v3436_v19, %v4077_v47  ;;  %v945_v22 = vpop.f32.mrb[27].mxu0 }
 0x11b   : > { %v946_v23 = vadd.f32 %v4077_v47, %v945_v22  ;;  %3627 = vmatprep.mubr.msk.f32.mxu1 %vm1591_vm1, %v1478_v18 }
 0x11c   : > { %3628 = vmatmul.mubr.msk.f32.gmra.mrb[24].mxu1 %vm1591_vm1, %v1479_v20  ;;  %v1481_v26 = vmax.f32 %v951_v21, 0.0 }
 0x11d   : > { %v1480_v24 = vmax.f32 %v946_v23, 0.0  ;;  %v3439_v25 = vpop.f32.mrb[28].mxu0 }
 0x11e   : > { %v961_v27 = vadd.f32 %v3439_v25, %v4077_v47  ;;  %v955_v28 = vpop.f32.mrb[29].mxu0 }
 0x11f   : > { %v956_v29 = vadd.f32 %v4077_v47, %v955_v28  ;;  %3630 = vmatprep.mubr.msk.f32.mxu1 %vm1591_vm1, %v1480_v24 }
 0x120   : > { %3631 = vmatmul.mubr.msk.f32.gmra.mrb[26].mxu1 %vm1591_vm1, %v1481_v26  ;;  %v1483_v32 = vmax.f32 %v961_v27, 0.0 }
 0x121   : > { %v1482_v30 = vmax.f32 %v956_v29, 0.0  ;;  %v3442_v31 = vpop.f32.mrb[30].mxu0 }
 0x122   : > { %v971_v33 = vadd.f32 %v3442_v31, %v4077_v47  ;;  %v965_v34 = vpop.f32.mrb[31].mxu0 }
 0x123   : > { %v966_v35 = vadd.f32 %v4077_v47, %v965_v34  ;;  %3633 = vmatprep.mubr.msk.f32.mxu1 %vm1591_vm1, %v1482_v30 }
 0x124   : > { %3634 = vmatmul.mubr.msk.f32.gmra.mrb[28].mxu1 %vm1591_vm1, %v1483_v32  ;;  %v1485_v38 = vmax.f32 %v971_v33, 0.0 }
 0x125   : > { %v1484_v36 = vmax.f32 %v966_v35, 0.0  ;;  %v3445_v37 = vpop.f32.mrb[32].mxu0 }
 0x126   : > { %v981_v39 = vadd.f32 %v3445_v37, %v4077_v47  ;;  %v975_v40 = vpop.f32.mrb[33].mxu0 }
 0x127   : > { %v976_v41 = vadd.f32 %v4077_v47, %v975_v40  ;;  %3636 = vmatprep.mubr.msk.f32.mxu1 %vm1591_vm1, %v1484_v36 }
 0x128   : > { %3637 = vmatmul.mubr.msk.f32.gmra.mrb[30].mxu1 %vm1591_vm1, %v1485_v38  ;;  %v1487_v44 = vmax.f32 %v981_v39, 0.0 }
 0x129   : > { %v1486_v42 = vmax.f32 %v976_v41, 0.0  ;;  %v3448_v43 = vpop.f32.mrb[34].mxu0 }
 0x12a   : > { %v991_v45 = vadd.f32 %v3448_v43, %v4077_v47  ;;  %v985_v46 = vpop.f32.mrb[35].mxu0 }
 0x12b   : > { %v986_v48 = vadd.f32 %v4077_v47, %v985_v46  ;;  %3639 = vmatprep.mubr.msk.f32.mxu1 %vm1591_vm1, %v1486_v42 }
 0x12c   : > { %3640 = vmatmul.mubr.msk.f32.gmra.mrb[32].mxu1 %vm1591_vm1, %v1487_v44  ;;  %v1489_v51 = vmax.f32 %v991_v45, 0.0 }
 0x12d   : > { %v1488_v49 = vmax.f32 %v986_v48, 0.0  ;;  %v3451_v50 = vpop.f32.mrb[36].mxu0 }
 0x12e   : > { %v1001_v52 = vadd.f32 %v3451_v50, %v4077_v47  ;;  %v995_v53 = vpop.f32.mrb[37].mxu0 }
 0x12f   : > { %v996_v54 = vadd.f32 %v4077_v47, %v995_v53  ;;  %3642 = vmatprep.mubr.msk.f32.mxu1 %vm1591_vm1, %v1488_v49 }
 0x130   : > { %3643 = vmatmul.mubr.msk.f32.gmra.mrb[34].mxu1 %vm1591_vm1, %v1489_v51  ;;  %v1491_v57 = vmax.f32 %v1001_v52, 0.0 }
 0x131   : > { %v1490_v55 = vmax.f32 %v996_v54, 0.0  ;;  %v3454_v56 = vpop.f32.mrb[38].mxu0 }
 0x132   : > { %v1011_v58 = vadd.f32 %v3454_v56, %v4077_v47  ;;  %v1005_v59 = vpop.f32.mrb[39].mxu0 }
 0x133   : > { %v1006_v60 = vadd.f32 %v4077_v47, %v1005_v59  ;;  %3645 = vmatprep.mubr.msk.f32.mxu1 %vm1591_vm1, %v1490_v55 }
 0x134   : > { %3646 = vmatmul.mubr.msk.f32.gmra.mrb[36].mxu1 %vm1591_vm1, %v1491_v57  ;;  %v1493_v63 = vmax.f32 %v1011_v58, 0.0 }
 0x135   : > { %v1492_v61 = vmax.f32 %v1006_v60, 0.0  ;;  %v3457_v62 = vpop.f32.mrb[40].mxu0 }
 0x136   : > { %v1021_v0 = vadd.f32 %v3457_v62, %v4077_v47  ;;  %v1015_v1 = vpop.f32.mrb[41].mxu0 }
 0x137   : > { %v1016_v2 = vadd.f32 %v4077_v47, %v1015_v1  ;;  %3648 = vmatprep.mubr.msk.f32.mxu1 %vm1591_vm1, %v1492_v61 }
 0x138   : > { %3649 = vmatmul.mubr.msk.f32.gmra.mrb[38].mxu1 %vm1591_vm1, %v1493_v63  ;;  %v1495_v5 = vmax.f32 %v1021_v0, 0.0 }
 0x139   : > { %v1494_v3 = vmax.f32 %v1016_v2, 0.0  ;;  %v3460_v4 = vpop.f32.mrb[42].mxu0 }
 0x13a   : > { %v1031_v6 = vadd.f32 %v3460_v4, %v4077_v47  ;;  %v1025_v7 = vpop.f32.mrb[43].mxu0 }
 0x13b   : > { %v1026_v8 = vadd.f32 %v4077_v47, %v1025_v7  ;;  %3651 = vmatprep.mubr.msk.f32.mxu1 %vm1591_vm1, %v1494_v3 }
 0x13c   : > { %3652 = vmatmul.mubr.msk.f32.gmra.mrb[40].mxu1 %vm1591_vm1, %v1495_v5  ;;  %v1497_v11 = vmax.f32 %v1031_v6, 0.0 }
 0x13d   : > { %v1496_v9 = vmax.f32 %v1026_v8, 0.0  ;;  %v3463_v10 = vpop.f32.mrb[44].mxu0 }
 0x13e   : > { %v1041_v12 = vadd.f32 %v3463_v10, %v4077_v47  ;;  %v1035_v13 = vpop.f32.mrb[45].mxu0 }
 0x13f   : > { %v1036_v14 = vadd.f32 %v4077_v47, %v1035_v13  ;;  %3654 = vmatprep.mubr.msk.f32.mxu1 %vm1591_vm1, %v1496_v9 }
 0x140   : > { %3655 = vmatmul.mubr.msk.f32.gmra.mrb[42].mxu1 %vm1591_vm1, %v1497_v11  ;;  %v1499_v17 = vmax.f32 %v1041_v12, 0.0 }
 0x141   : > { %v1498_v15 = vmax.f32 %v1036_v14, 0.0  ;;  %v3466_v16 = vpop.f32.mrb[46].mxu0 }
 0x142   : > { %v1051_v18 = vadd.f32 %v3466_v16, %v4077_v47  ;;  %v1045_v19 = vpop.f32.mrb[47].mxu0 }
 0x143   : > { %v1046_v20 = vadd.f32 %v4077_v47, %v1045_v19  ;;  %3657 = vmatprep.mubr.msk.f32.mxu1 %vm1591_vm1, %v1498_v15 }
 0x144   : > { %3658 = vmatmul.mubr.msk.f32.gmra.mrb[44].mxu1 %vm1591_vm1, %v1499_v17  ;;  %v1501_v23 = vmax.f32 %v1051_v18, 0.0 }
 0x145   : > { %v1500_v21 = vmax.f32 %v1046_v20, 0.0  ;;  %v3469_v22 = vpop.f32.mrb[48].mxu0 }
 0x146   : > { %v1061_v24 = vadd.f32 %v3469_v22, %v4077_v47  ;;  %v1055_v25 = vpop.f32.mrb[49].mxu0 }
 0x147   : > { %v1056_v26 = vadd.f32 %v4077_v47, %v1055_v25  ;;  %3660 = vmatprep.mubr.msk.f32.mxu1 %vm1591_vm1, %v1500_v21 }
 0x148   : > { %3661 = vmatmul.mubr.msk.f32.gmra.mrb[46].mxu1 %vm1591_vm1, %v1501_v23  ;;  %v1503_v29 = vmax.f32 %v1061_v24, 0.0 }
 0x149   : > { %v1502_v27 = vmax.f32 %v1056_v26, 0.0  ;;  %v3472_v28 = vpop.f32.mrb[50].mxu0 }
 0x14a   : > { %v1071_v30 = vadd.f32 %v3472_v28, %v4077_v47  ;;  %v1065_v31 = vpop.f32.mrb[51].mxu0 }
 0x14b   : > { %v1066_v32 = vadd.f32 %v4077_v47, %v1065_v31  ;;  %3663 = vmatprep.mubr.msk.f32.mxu1 %vm1591_vm1, %v1502_v27 }
 0x14c   : > { %3664 = vmatmul.mubr.msk.f32.gmra.mrb[48].mxu1 %vm1591_vm1, %v1503_v29  ;;  %v1505_v35 = vmax.f32 %v1071_v30, 0.0 }
 0x14d   : > { %v1504_v33 = vmax.f32 %v1066_v32, 0.0  ;;  %v3475_v34 = vpop.f32.mrb[52].mxu0 }
 0x14e   : > { %v1081_v36 = vadd.f32 %v3475_v34, %v4077_v47  ;;  %v1075_v37 = vpop.f32.mrb[53].mxu0 }
 0x14f   : > { %v1076_v38 = vadd.f32 %v4077_v47, %v1075_v37  ;;  %3666 = vmatprep.mubr.msk.f32.mxu1 %vm1591_vm1, %v1504_v33 }
 0x150   : > { %3667 = vmatmul.mubr.msk.f32.gmra.mrb[50].mxu1 %vm1591_vm1, %v1505_v35  ;;  %v1507_v41 = vmax.f32 %v1081_v36, 0.0 }
 0x151   : > { %v1506_v39 = vmax.f32 %v1076_v38, 0.0  ;;  %v3478_v40 = vpop.f32.mrb[54].mxu0 }
 0x152   : > { %v1091_v42 = vadd.f32 %v3478_v40, %v4077_v47  ;;  %v1085_v43 = vpop.f32.mrb[55].mxu0 }
 0x153   : > { %v1086_v44 = vadd.f32 %v4077_v47, %v1085_v43  ;;  %3669 = vmatprep.mubr.msk.f32.mxu1 %vm1591_vm1, %v1506_v39 }
 0x154   : > { %3670 = vmatmul.mubr.msk.f32.gmra.mrb[52].mxu1 %vm1591_vm1, %v1507_v41  ;;  %v1509_v48 = vmax.f32 %v1091_v42, 0.0 }
 0x155   : > { %v1508_v45 = vmax.f32 %v1086_v44, 0.0  ;;  %v3481_v46 = vpop.f32.mrb[56].mxu0 }
 0x156   : > { %v1101_v49 = vadd.f32 %v3481_v46, %v4077_v47  ;;  %v1095_v50 = vpop.f32.mrb[57].mxu0 }
 0x157   : > { %v1096_v51 = vadd.f32 %v4077_v47, %v1095_v50  ;;  %3672 = vmatprep.mubr.msk.f32.mxu1 %vm1591_vm1, %v1508_v45 }
 0x158   : > { %3673 = vmatmul.mubr.msk.f32.gmra.mrb[54].mxu1 %vm1591_vm1, %v1509_v48  ;;  %v1511_v54 = vmax.f32 %v1101_v49, 0.0 }
 0x159   : > { %v1510_v52 = vmax.f32 %v1096_v51, 0.0  ;;  %v3484_v53 = vpop.f32.mrb[58].mxu0 }
 0x15a   : > { %v1111_v55 = vadd.f32 %v3484_v53, %v4077_v47  ;;  %v1105_v56 = vpop.f32.mrb[59].mxu0 }
 0x15b   : > { %v1106_v57 = vadd.f32 %v4077_v47, %v1105_v56  ;;  %3675 = vmatprep.mubr.msk.f32.mxu1 %vm1591_vm1, %v1510_v52 }
 0x15c   : > { %3676 = vmatmul.mubr.msk.f32.gmra.mrb[56].mxu1 %vm1591_vm1, %v1511_v54  ;;  %v1513_v60 = vmax.f32 %v1111_v55, 0.0 }
 0x15d   : > { %v1512_v58 = vmax.f32 %v1106_v57, 0.0  ;;  %v3487_v59 = vpop.f32.mrb[60].mxu0 }
 0x15e   : > { %v1121_v61 = vadd.f32 %v3487_v59, %v4077_v47  ;;  %v1115_v62 = vpop.f32.mrb[61].mxu0 }
 0x15f   : > { %v1116_v63 = vadd.f32 %v4077_v47, %v1115_v62  ;;  %3678 = vmatprep.mubr.msk.f32.mxu1 %vm1591_vm1, %v1512_v58 }
 0x160   : > { %3679 = vmatmul.mubr.msk.f32.gmra.mrb[58].mxu1 %vm1591_vm1, %v1513_v60  ;;  %v1515_v2 = vmax.f32 %v1121_v61, 0.0 }
 0x161   : > { %v1514_v0 = vmax.f32 %v1116_v63, 0.0  ;;  %v3490_v1 = vpop.f32.mrb[62].mxu0 }
 0x162   : > { %v1131_v3 = vadd.f32 %v3490_v1, %v4077_v47  ;;  %v1125_v4 = vpop.f32.mrb[63].mxu0 }
 0x163   : > { %v1126_v5 = vadd.f32 %v4077_v47, %v1125_v4  ;;  %3681 = vmatprep.mubr.msk.f32.mxu1 %vm1591_vm1, %v1514_v0 }
 0x164   : > { %3682 = vmatmul.mubr.msk.f32.gmra.mrb[60].mxu1 %vm1591_vm1, %v1515_v2  ;;  %v1517_v8 = vmax.f32 %v1131_v3, 0.0 }
 0x165   : > { %v1516_v6 = vmax.f32 %v1126_v5, 0.0  ;;  %v3493_v7 = vpop.f32.mrb[64].mxu0 }
 0x166   : > { %v1141_v9 = vadd.f32 %v3493_v7, %v4077_v47  ;;  %v1135_v10 = vpop.f32.mrb[65].mxu0 }
 0x167   : > { %v1136_v11 = vadd.f32 %v4077_v47, %v1135_v10  ;;  %3684 = vmatprep.mubr.msk.f32.mxu1 %vm1591_vm1, %v1516_v6 }
 0x168   : > { %3685 = vmatmul.mubr.msk.f32.gmra.mrb[62].mxu1 %vm1591_vm1, %v1517_v8  ;;  %v1519_v14 = vmax.f32 %v1141_v9, 0.0 }
 0x169   : > { %v1518_v12 = vmax.f32 %v1136_v11, 0.0  ;;  %v3496_v13 = vpop.f32.mrb[66].mxu0 }
 0x16a   : > { %v1151_v15 = vadd.f32 %v3496_v13, %v4077_v47  ;;  %v1145_v16 = vpop.f32.mrb[67].mxu0 }
 0x16b   : > { %v1146_v17 = vadd.f32 %v4077_v47, %v1145_v16  ;;  %3687 = vmatprep.mubr.msk.f32.mxu1 %vm1591_vm1, %v1518_v12 }
 0x16c   : > { %3688 = vmatmul.mubr.msk.f32.gmra.mrb[64].mxu1 %vm1591_vm1, %v1519_v14  ;;  %v1521_v20 = vmax.f32 %v1151_v15, 0.0 }
 0x16d   : > { %v1520_v18 = vmax.f32 %v1146_v17, 0.0  ;;  %v3499_v19 = vpop.f32.mrb[68].mxu0 }
 0x16e   : > { %v1161_v21 = vadd.f32 %v3499_v19, %v4077_v47  ;;  %v1155_v22 = vpop.f32.mrb[69].mxu0 }
 0x16f   : > { %v1156_v23 = vadd.f32 %v4077_v47, %v1155_v22  ;;  %3690 = vmatprep.mubr.msk.f32.mxu1 %vm1591_vm1, %v1520_v18 }
 0x170   : > { %3691 = vmatmul.mubr.msk.f32.gmra.mrb[66].mxu1 %vm1591_vm1, %v1521_v20  ;;  %v1523_v26 = vmax.f32 %v1161_v21, 0.0 }
 0x171   : > { %v1522_v24 = vmax.f32 %v1156_v23, 0.0  ;;  %v3502_v25 = vpop.f32.mrb[70].mxu0 }
 0x172   : > { %v1171_v27 = vadd.f32 %v3502_v25, %v4077_v47  ;;  %v1165_v28 = vpop.f32.mrb[71].mxu0 }
 0x173   : > { %v1166_v29 = vadd.f32 %v4077_v47, %v1165_v28  ;;  %3693 = vmatprep.mubr.msk.f32.mxu1 %vm1591_vm1, %v1522_v24 }
 0x174   : > { %3694 = vmatmul.mubr.msk.f32.gmra.mrb[68].mxu1 %vm1591_vm1, %v1523_v26  ;;  %v1525_v32 = vmax.f32 %v1171_v27, 0.0 }
 0x175   : > { %v1524_v30 = vmax.f32 %v1166_v29, 0.0  ;;  %v3505_v31 = vpop.f32.mrb[72].mxu0 }
 0x176   : > { %v1181_v33 = vadd.f32 %v3505_v31, %v4077_v47  ;;  %v1175_v34 = vpop.f32.mrb[73].mxu0 }
 0x177   : > { %v1176_v35 = vadd.f32 %v4077_v47, %v1175_v34  ;;  %3696 = vmatprep.mubr.msk.f32.mxu1 %vm1591_vm1, %v1524_v30 }
 0x178   : > { %3697 = vmatmul.mubr.msk.f32.gmra.mrb[70].mxu1 %vm1591_vm1, %v1525_v32  ;;  %v1527_v38 = vmax.f32 %v1181_v33, 0.0 }
 0x179   : > { %v1526_v36 = vmax.f32 %v1176_v35, 0.0  ;;  %v3508_v37 = vpop.f32.mrb[74].mxu0 }
 0x17a   : > { %v1191_v39 = vadd.f32 %v3508_v37, %v4077_v47  ;;  %v1185_v40 = vpop.f32.mrb[75].mxu0 }
 0x17b   : > { %v1186_v41 = vadd.f32 %v4077_v47, %v1185_v40  ;;  %3699 = vmatprep.mubr.msk.f32.mxu1 %vm1591_vm1, %v1526_v36 }
 0x17c   : > { %3700 = vmatmul.mubr.msk.f32.gmra.mrb[72].mxu1 %vm1591_vm1, %v1527_v38  ;;  %v1529_v44 = vmax.f32 %v1191_v39, 0.0 }
 0x17d   : > { %v1528_v42 = vmax.f32 %v1186_v41, 0.0  ;;  %v3511_v43 = vpop.f32.mrb[76].mxu0 }
 0x17e   : > { %v1201_v45 = vadd.f32 %v3511_v43, %v4077_v47  ;;  %v1195_v46 = vpop.f32.mrb[77].mxu0 }
 0x17f   : > { %v1196_v48 = vadd.f32 %v4077_v47, %v1195_v46  ;;  %3702 = vmatprep.mubr.msk.f32.mxu1 %vm1591_vm1, %v1528_v42 }
 0x180   : > { %3703 = vmatmul.mubr.msk.f32.gmra.mrb[74].mxu1 %vm1591_vm1, %v1529_v44  ;;  %v1531_v51 = vmax.f32 %v1201_v45, 0.0 }
 0x181   : > { %v1530_v49 = vmax.f32 %v1196_v48, 0.0  ;;  %v3514_v50 = vpop.f32.mrb[78].mxu0 }
 0x182   : > { %v1211_v52 = vadd.f32 %v3514_v50, %v4077_v47  ;;  %v1205_v53 = vpop.f32.mrb[79].mxu0 }
 0x183   : > { %v1206_v54 = vadd.f32 %v4077_v47, %v1205_v53  ;;  %3705 = vmatprep.mubr.msk.f32.mxu1 %vm1591_vm1, %v1530_v49 }
 0x184   : > { %3706 = vmatmul.mubr.msk.f32.gmra.mrb[76].mxu1 %vm1591_vm1, %v1531_v51  ;;  %v1533_v57 = vmax.f32 %v1211_v52, 0.0 }
 0x185   : > { %v1532_v55 = vmax.f32 %v1206_v54, 0.0  ;;  %v3517_v56 = vpop.f32.mrb[80].mxu0 }
 0x186   : > { %v1221_v58 = vadd.f32 %v3517_v56, %v4077_v47  ;;  %v1215_v59 = vpop.f32.mrb[81].mxu0 }
 0x187   : > { %v1216_v60 = vadd.f32 %v4077_v47, %v1215_v59  ;;  %3708 = vmatprep.mubr.msk.f32.mxu1 %vm1591_vm1, %v1532_v55 }
 0x188   : > { %3709 = vmatmul.mubr.msk.f32.gmra.mrb[78].mxu1 %vm1591_vm1, %v1533_v57  ;;  %v1535_v63 = vmax.f32 %v1221_v58, 0.0 }
 0x189   : > { %v1534_v61 = vmax.f32 %v1216_v60, 0.0  ;;  %v3520_v62 = vpop.f32.mrb[82].mxu0 }
 0x18a   : > { %v1231_v0 = vadd.f32 %v3520_v62, %v4077_v47  ;;  %v1225_v1 = vpop.f32.mrb[83].mxu0 }
 0x18b   : > { %v1226_v2 = vadd.f32 %v4077_v47, %v1225_v1  ;;  %3711 = vmatprep.mubr.msk.f32.mxu1 %vm1591_vm1, %v1534_v61 }
 0x18c   : > { %3712 = vmatmul.mubr.msk.f32.gmra.mrb[80].mxu1 %vm1591_vm1, %v1535_v63  ;;  %v1537_v5 = vmax.f32 %v1231_v0, 0.0 }
 0x18d   : > { %v1536_v3 = vmax.f32 %v1226_v2, 0.0  ;;  %v3523_v4 = vpop.f32.mrb[84].mxu0 }
 0x18e   : > { %v1241_v6 = vadd.f32 %v3523_v4, %v4077_v47  ;;  %v1235_v7 = vpop.f32.mrb[85].mxu0 }
 0x18f   : > { %v1236_v8 = vadd.f32 %v4077_v47, %v1235_v7  ;;  %3714 = vmatprep.mubr.msk.f32.mxu1 %vm1591_vm1, %v1536_v3 }
 0x190   : > { %3715 = vmatmul.mubr.msk.f32.gmra.mrb[82].mxu1 %vm1591_vm1, %v1537_v5  ;;  %v1539_v11 = vmax.f32 %v1241_v6, 0.0 }
 0x191   : > { %v1538_v9 = vmax.f32 %v1236_v8, 0.0  ;;  %v3526_v10 = vpop.f32.mrb[86].mxu0 }
 0x192   : > { %v1251_v12 = vadd.f32 %v3526_v10, %v4077_v47  ;;  %v1245_v13 = vpop.f32.mrb[87].mxu0 }
 0x193   : > { %v1246_v14 = vadd.f32 %v4077_v47, %v1245_v13  ;;  %3717 = vmatprep.mubr.msk.f32.mxu1 %vm1591_vm1, %v1538_v9 }
 0x194   : > { %3718 = vmatmul.mubr.msk.f32.gmra.mrb[84].mxu1 %vm1591_vm1, %v1539_v11  ;;  %v1541_v17 = vmax.f32 %v1251_v12, 0.0 }
 0x195   : > { %v1540_v15 = vmax.f32 %v1246_v14, 0.0  ;;  %v3529_v16 = vpop.f32.mrb[88].mxu0  ;;  %v4339_v14 = vld [vmem:[%s4786_s4] ss:$0 sm:$0xff] }
 0x196   : > { %v1261_v18 = vadd.f32 %v3529_v16, %v4077_v47  ;;  %v1255_v19 = vpop.f32.mrb[89].mxu0 }
 0x197   : > { %v1256_v20 = vadd.f32 %v4077_v47, %v1255_v19  ;;  %3720 = vmatprep.mubr.msk.f32.mxu1 %vm1591_vm1, %v1540_v15 }
 0x198   : > { %3721 = vmatmul.mubr.msk.f32.gmra.mrb[86].mxu1 %vm1591_vm1, %v1541_v17  ;;  %v1543_v23 = vmax.f32 %v1261_v18, 0.0 }
 0x199   : > { %v1542_v21 = vmax.f32 %v1256_v20, 0.0  ;;  %v3532_v22 = vpop.f32.mrb[90].mxu0 }
 0x19a   : > { %v1271_v24 = vadd.f32 %v3532_v22, %v4077_v47  ;;  %v1265_v25 = vpop.f32.mrb[91].mxu0 }
 0x19b   : > { %v1266_v26 = vadd.f32 %v4077_v47, %v1265_v25  ;;  %3723 = vmatprep.mubr.msk.f32.mxu1 %vm1591_vm1, %v1542_v21 }
 0x19c   : > { %3724 = vmatmul.mubr.msk.f32.gmra.mrb[88].mxu1 %vm1591_vm1, %v1543_v23  ;;  %v1545_v29 = vmax.f32 %v1271_v24, 0.0 }
 0x19d   : > { %v1544_v27 = vmax.f32 %v1266_v26, 0.0  ;;  %v3535_v28 = vpop.f32.mrb[92].mxu0 }
 0x19e   : > { %v1281_v30 = vadd.f32 %v3535_v28, %v4077_v47  ;;  %v1275_v31 = vpop.f32.mrb[93].mxu0 }
 0x19f   : > { %v1276_v32 = vadd.f32 %v4077_v47, %v1275_v31  ;;  %3726 = vmatprep.mubr.msk.f32.mxu1 %vm1591_vm1, %v1544_v27 }
 0x1a0   : > { %3727 = vmatmul.mubr.msk.f32.gmra.mrb[90].mxu1 %vm1591_vm1, %v1545_v29  ;;  %v1547_v35 = vmax.f32 %v1281_v30, 0.0 }
 0x1a1   : > { %v1546_v33 = vmax.f32 %v1276_v32, 0.0  ;;  %v3538_v34 = vpop.f32.mrb[94].mxu0 }
 0x1a2   : > { %v1291_v36 = vadd.f32 %v3538_v34, %v4077_v47  ;;  %v1285_v37 = vpop.f32.mrb[95].mxu0 }
 0x1a3   : > { %v1286_v38 = vadd.f32 %v4077_v47, %v1285_v37  ;;  %3729 = vmatprep.mubr.msk.f32.mxu1 %vm1591_vm1, %v1546_v33 }
 0x1a4   : > { %3730 = vmatmul.mubr.msk.f32.gmra.mrb[92].mxu1 %vm1591_vm1, %v1547_v35  ;;  %v1549_v41 = vmax.f32 %v1291_v36, 0.0 }
 0x1a5   : > { %v1548_v39 = vmax.f32 %v1286_v38, 0.0  ;;  %v3541_v40 = vpop.f32.mrb[96].mxu0 }
 0x1a6   : > { %v1301_v42 = vadd.f32 %v3541_v40, %v4077_v47  ;;  %v1295_v43 = vpop.f32.mrb[97].mxu0 }
 0x1a7   : > { %v1296_v44 = vadd.f32 %v4077_v47, %v1295_v43  ;;  %3732 = vmatprep.mubr.msk.f32.mxu1 %vm1591_vm1, %v1548_v39 }
 0x1a8   : > { %3733 = vmatmul.mubr.msk.f32.gmra.mrb[94].mxu1 %vm1591_vm1, %v1549_v41  ;;  %v1551_v48 = vmax.f32 %v1301_v42, 0.0 }
 0x1a9   : > { %v1550_v45 = vmax.f32 %v1296_v44, 0.0  ;;  %v3544_v46 = vpop.f32.mrb[98].mxu0 }
 0x1aa   : > { %v1311_v49 = vadd.f32 %v3544_v46, %v4077_v47  ;;  %v1305_v50 = vpop.f32.mrb[99].mxu0 }
 0x1ab   : > { %v1306_v51 = vadd.f32 %v4077_v47, %v1305_v50  ;;  %3735 = vmatprep.mubr.msk.f32.mxu1 %vm1591_vm1, %v1550_v45 }
 0x1ac   : > { %3736 = vmatmul.mubr.msk.f32.gmra.mrb[96].mxu1 %vm1591_vm1, %v1551_v48  ;;  %v1553_v54 = vmax.f32 %v1311_v49, 0.0 }
 0x1ad   : > { %v1552_v52 = vmax.f32 %v1306_v51, 0.0  ;;  %v3547_v53 = vpop.f32.mrb[100].mxu0 }
 0x1ae   : > { %v1321_v55 = vadd.f32 %v3547_v53, %v4077_v47  ;;  %v1315_v56 = vpop.f32.mrb[101].mxu0 }
 0x1af   : > { %v1316_v57 = vadd.f32 %v4077_v47, %v1315_v56  ;;  %3738 = vmatprep.mubr.msk.f32.mxu1 %vm1591_vm1, %v1552_v52 }
 0x1b0   : > { %3739 = vmatmul.mubr.msk.f32.gmra.mrb[98].mxu1 %vm1591_vm1, %v1553_v54  ;;  %v1555_v60 = vmax.f32 %v1321_v55, 0.0 }
 0x1b1   : > { %v1554_v58 = vmax.f32 %v1316_v57, 0.0  ;;  %v3550_v59 = vpop.f32.mrb[102].mxu0 }
 0x1b2   : > { %v1331_v61 = vadd.f32 %v3550_v59, %v4077_v47  ;;  %v1325_v62 = vpop.f32.mrb[103].mxu0 }
 0x1b3   : > { %v1326_v63 = vadd.f32 %v4077_v47, %v1325_v62  ;;  %3741 = vmatprep.mubr.msk.f32.mxu1 %vm1591_vm1, %v1554_v58 }
 0x1b4   : > { %3742 = vmatmul.mubr.msk.f32.gmra.mrb[100].mxu1 %vm1591_vm1, %v1555_v60  ;;  %v1557_v2 = vmax.f32 %v1331_v61, 0.0 }
 0x1b5   : > { %v1556_v0 = vmax.f32 %v1326_v63, 0.0  ;;  %v3553_v1 = vpop.f32.mrb[104].mxu0 }
 0x1b6   : > { %v1341_v3 = vadd.f32 %v3553_v1, %v4077_v47  ;;  %v1335_v4 = vpop.f32.mrb[105].mxu0 }
 0x1b7   : > { %v1336_v5 = vadd.f32 %v4077_v47, %v1335_v4  ;;  %3744 = vmatprep.mubr.msk.f32.mxu1 %vm1591_vm1, %v1556_v0 }
 0x1b8   : > { %3745 = vmatmul.mubr.msk.f32.gmra.mrb[102].mxu1 %vm1591_vm1, %v1557_v2  ;;  %v1559_v8 = vmax.f32 %v1341_v3, 0.0 }
 0x1b9   : > { %v1558_v6 = vmax.f32 %v1336_v5, 0.0  ;;  %v3556_v7 = vpop.f32.mrb[106].mxu0 }
 0x1ba   : > { %v1351_v9 = vadd.f32 %v3556_v7, %v4077_v47  ;;  %v1345_v10 = vpop.f32.mrb[107].mxu0 }
 0x1bb   : > { %v1346_v11 = vadd.f32 %v4077_v47, %v1345_v10  ;;  %3747 = vmatprep.mubr.msk.f32.mxu1 %vm1591_vm1, %v1558_v6 }
 0x1bc   : > { %3748 = vmatmul.mubr.msk.f32.gmra.mrb[104].mxu1 %vm1591_vm1, %v1559_v8  ;;  %v1561_v15 = vmax.f32 %v1351_v9, 0.0 }
 0x1bd   : > { %v1560_v12 = vmax.f32 %v1346_v11, 0.0  ;;  %v3559_v13 = vpop.f32.mrb[108].mxu0 }
 0x1be   : > { %v1361_v16 = vadd.f32 %v3559_v13, %v4077_v47  ;;  %v1355_v17 = vpop.f32.mrb[109].mxu0 }
 0x1bf   : > { %v1356_v18 = vadd.f32 %v4077_v47, %v1355_v17  ;;  %v3593_v19 = vpop.f32.mrb[0].mxu1  ;;  %3750 = vmatprep.mubr.msk.f32.mxu1 %vm1591_vm1, %v1560_v12 }
 0x1c0   : > { %v2048_v20 = vadd.f32 %v3593_v19, %v4339_v14  ;;  %v2042_v21 = vpop.f32.mrb[1].mxu1  ;;  %3751 = vmatmul.mubr.msk.f32.gmra.mrb[106].mxu1 %vm1591_vm1, %v1561_v15  ;;  %v1563_v25 = vmax.f32 %v1361_v16, 0.0 }
 0x1c1   : > { %v1562_v22 = vmax.f32 %v1356_v18, 0.0  ;;  %v2043_v23 = vadd.f32 %v4339_v14, %v2042_v21  ;;  %v3562_v24 = vpop.f32.mrb[110].mxu0 }
 0x1c2   : > { %2682 = vst.msk [vmem:[%s4347_s12 + $0x8] sm:$0xff] %vm364_vm0, %v2048_v20  ;;  %v1371_v26 = vadd.f32 %v3562_v24, %v4077_v47  ;;  %v1365_v27 = vpop.f32.mrb[111].mxu0 }
 0x1c3   : > { %2681 = vst.msk [vmem:[%s4347_s12] sm:$0xff] %vm364_vm0, %v2043_v23  ;;  %v1366_v28 = vadd.f32 %v4077_v47, %v1365_v27  ;;  %v3596_v29 = vpop.f32.mrb[2].mxu1  ;;  %3753 = vmatprep.mubr.msk.f32.mxu1 %vm1591_vm1, %v1562_v22 }
 0x1c4   : > { %v2058_v30 = vadd.f32 %v3596_v29, %v4339_v14  ;;  %v2052_v31 = vpop.f32.mrb[3].mxu1  ;;  %3754 = vmatmul.mubr.msk.f32.gmra.mrb[108].mxu1 %vm1591_vm1, %v1563_v25  ;;  %v1565_v35 = vmax.f32 %v1371_v26, 0.0 }
 0x1c5   : > { %v1564_v32 = vmax.f32 %v1366_v28, 0.0  ;;  %v2053_v33 = vadd.f32 %v4339_v14, %v2052_v31  ;;  %v3565_v34 = vpop.f32.mrb[112].mxu0 }
 0x1c6   : > { %2684 = vst.msk [vmem:[%s4347_s12 + $0x18] sm:$0xff] %vm364_vm0, %v2058_v30  ;;  %v1381_v36 = vadd.f32 %v3565_v34, %v4077_v47  ;;  %v1375_v37 = vpop.f32.mrb[113].mxu0 }
 0x1c7   : > { %2683 = vst.msk [vmem:[%s4347_s12 + $0x10] sm:$0xff] %vm364_vm0, %v2053_v33  ;;  %v1376_v38 = vadd.f32 %v4077_v47, %v1375_v37  ;;  %v3599_v39 = vpop.f32.mrb[4].mxu1  ;;  %3756 = vmatprep.mubr.msk.f32.mxu1 %vm1591_vm1, %v1564_v32  ;;  %v4379_v47 = vld [vmem:[%s4784_s2] ss:$0 sm:$0xff] }
 0x1c8   : > { %v2068_v40 = vadd.f32 %v3599_v39, %v4339_v14  ;;  %v2062_v41 = vpop.f32.mrb[5].mxu1  ;;  %3757 = vmatmul.mubr.msk.f32.gmra.mrb[110].mxu1 %vm1591_vm1, %v1565_v35  ;;  %v1567_v45 = vmax.f32 %v1381_v36, 0.0 }
 0x1c9   : > { %v1566_v42 = vmax.f32 %v1376_v38, 0.0  ;;  %v2063_v43 = vadd.f32 %v4339_v14, %v2062_v41  ;;  %v3568_v44 = vpop.f32.mrb[114].mxu0 }
 0x1ca   : > { %2686 = vst.msk [vmem:[%s4347_s12 + $0x28] sm:$0xff] %vm364_vm0, %v2068_v40  ;;  %v1391_v46 = vadd.f32 %v4379_v47, %v3568_v44  ;;  %v1385_v48 = vpop.f32.mrb[115].mxu0 }
 0x1cb   : > { %2685 = vst.msk [vmem:[%s4347_s12 + $0x20] sm:$0xff] %vm364_vm0, %v2063_v43  ;;  %v1386_v49 = vadd.f32 %v4379_v47, %v1385_v48  ;;  %v3602_v50 = vpop.f32.mrb[6].mxu1  ;;  %3759 = vmatprep.mubr.msk.f32.mxu1 %vm1591_vm1, %v1566_v42 }
 0x1cc   : > { %v2078_v51 = vadd.f32 %v3602_v50, %v4339_v14  ;;  %v2072_v52 = vpop.f32.mrb[7].mxu1  ;;  %3760 = vmatmul.mubr.msk.f32.gmra.mrb[112].mxu1 %vm1591_vm1, %v1567_v45  ;;  %v1569_v56 = vmax.f32 %v1391_v46, 0.0 }
 0x1cd   : > { %v1568_v53 = vmax.f32 %v1386_v49, 0.0  ;;  %v2073_v54 = vadd.f32 %v4339_v14, %v2072_v52  ;;  %v3571_v55 = vpop.f32.mrb[116].mxu0 }
 0x1ce   : > { %2688 = vst.msk [vmem:[%s4347_s12 + $0x38] sm:$0xff] %vm364_vm0, %v2078_v51  ;;  %v1401_v57 = vadd.f32 %v4379_v47, %v3571_v55  ;;  %v1395_v58 = vpop.f32.mrb[117].mxu0 }
 0x1cf   : > { %2687 = vst.msk [vmem:[%s4347_s12 + $0x30] sm:$0xff] %vm364_vm0, %v2073_v54  ;;  %v1396_v59 = vadd.f32 %v4379_v47, %v1395_v58  ;;  %v3605_v60 = vpop.f32.mrb[8].mxu1  ;;  %3762 = vmatprep.mubr.msk.f32.mxu1 %vm1591_vm1, %v1568_v53 }
 0x1d0   : > { %v2088_v61 = vadd.f32 %v3605_v60, %v4339_v14  ;;  %v2082_v62 = vpop.f32.mrb[9].mxu1  ;;  %3763 = vmatmul.mubr.msk.f32.gmra.mrb[114].mxu1 %vm1591_vm1, %v1569_v56  ;;  %v1571_v2 = vmax.f32 %v1401_v57, 0.0 }
 0x1d1   : > { %v1570_v63 = vmax.f32 %v1396_v59, 0.0  ;;  %v2083_v0 = vadd.f32 %v4339_v14, %v2082_v62  ;;  %v3574_v1 = vpop.f32.mrb[118].mxu0 }
 0x1d2   : > { %2690 = vst.msk [vmem:[%s4347_s12 + $0x48] sm:$0xff] %vm364_vm0, %v2088_v61  ;;  %v1411_v3 = vadd.f32 %v4379_v47, %v3574_v1  ;;  %v1405_v4 = vpop.f32.mrb[119].mxu0 }
 0x1d3   : > { %2689 = vst.msk [vmem:[%s4347_s12 + $0x40] sm:$0xff] %vm364_vm0, %v2083_v0  ;;  %v1406_v5 = vadd.f32 %v4379_v47, %v1405_v4  ;;  %v3608_v6 = vpop.f32.mrb[10].mxu1  ;;  %3765 = vmatprep.mubr.msk.f32.mxu1 %vm1591_vm1, %v1570_v63 }
 0x1d4   : > { %v2098_v7 = vadd.f32 %v3608_v6, %v4339_v14  ;;  %v2092_v8 = vpop.f32.mrb[11].mxu1  ;;  %3766 = vmatmul.mubr.msk.f32.gmra.mrb[116].mxu1 %vm1591_vm1, %v1571_v2  ;;  %v1573_v12 = vmax.f32 %v1411_v3, 0.0 }
 0x1d5   : > { %v1572_v9 = vmax.f32 %v1406_v5, 0.0  ;;  %v2093_v10 = vadd.f32 %v4339_v14, %v2092_v8  ;;  %v3577_v11 = vpop.f32.mrb[120].mxu0 }
 0x1d6   : > { %2692 = vst.msk [vmem:[%s4347_s12 + $0x58] sm:$0xff] %vm364_vm0, %v2098_v7  ;;  %v1421_v13 = vadd.f32 %v4379_v47, %v3577_v11  ;;  %v1415_v15 = vpop.f32.mrb[121].mxu0 }
 0x1d7   : > { %2691 = vst.msk [vmem:[%s4347_s12 + $0x50] sm:$0xff] %vm364_vm0, %v2093_v10  ;;  %v1416_v16 = vadd.f32 %v4379_v47, %v1415_v15  ;;  %v3611_v17 = vpop.f32.mrb[12].mxu1  ;;  %3768 = vmatprep.mubr.msk.f32.mxu1 %vm1591_vm1, %v1572_v9 }
 0x1d8   : > { %v2108_v18 = vadd.f32 %v3611_v17, %v4339_v14  ;;  %v2102_v19 = vpop.f32.mrb[13].mxu1  ;;  %3769 = vmatmul.mubr.msk.f32.gmra.mrb[118].mxu1 %vm1591_vm1, %v1573_v12  ;;  %v1575_v23 = vmax.f32 %v1421_v13, 0.0 }
 0x1d9   : > { %v1574_v20 = vmax.f32 %v1416_v16, 0.0  ;;  %v2103_v21 = vadd.f32 %v4339_v14, %v2102_v19  ;;  %v3580_v22 = vpop.f32.mrb[122].mxu0 }
 0x1da   : > { %2694 = vst.msk [vmem:[%s4347_s12 + $0x68] sm:$0xff] %vm364_vm0, %v2108_v18  ;;  %v1431_v24 = vadd.f32 %v4379_v47, %v3580_v22  ;;  %v1425_v25 = vpop.f32.mrb[123].mxu0 }
 0x1db   : > { %2693 = vst.msk [vmem:[%s4347_s12 + $0x60] sm:$0xff] %vm364_vm0, %v2103_v21  ;;  %v1426_v26 = vadd.f32 %v4379_v47, %v1425_v25  ;;  %v3614_v27 = vpop.f32.mrb[14].mxu1  ;;  %3771 = vmatprep.mubr.msk.f32.mxu1 %vm1591_vm1, %v1574_v20 }
 0x1dc   : > { %v2118_v28 = vadd.f32 %v3614_v27, %v4339_v14  ;;  %v2112_v29 = vpop.f32.mrb[15].mxu1  ;;  %3772 = vmatmul.mubr.msk.f32.gmra.mrb[120].mxu1 %vm1591_vm1, %v1575_v23  ;;  %v1577_v33 = vmax.f32 %v1431_v24, 0.0 }
 0x1dd   : > { %v1576_v30 = vmax.f32 %v1426_v26, 0.0  ;;  %v2113_v31 = vadd.f32 %v4339_v14, %v2112_v29  ;;  %v3583_v32 = vpop.f32.mrb[124].mxu0 }
 0x1de   : > { %2696 = vst.msk [vmem:[%s4347_s12 + $0x78] sm:$0xff] %vm364_vm0, %v2118_v28  ;;  %v1441_v34 = vadd.f32 %v4379_v47, %v3583_v32  ;;  %v1435_v35 = vpop.f32.mrb[125].mxu0 }
 0x1df   : > { %2695 = vst.msk [vmem:[%s4347_s12 + $0x70] sm:$0xff] %vm364_vm0, %v2113_v31  ;;  %v1436_v36 = vadd.f32 %v4379_v47, %v1435_v35  ;;  %v3617_v37 = vpop.f32.mrb[16].mxu1  ;;  %3774 = vmatprep.mubr.msk.f32.mxu1 %vm1591_vm1, %v1576_v30 }
 0x1e0   : > { %v2128_v38 = vadd.f32 %v3617_v37, %v4339_v14  ;;  %v2122_v39 = vpop.f32.mrb[17].mxu1  ;;  %3775 = vmatmul.mubr.msk.f32.gmra.mrb[122].mxu1 %vm1591_vm1, %v1577_v33  ;;  %v1579_v43 = vmax.f32 %v1441_v34, 0.0 }
 0x1e1   : > { %v1578_v40 = vmax.f32 %v1436_v36, 0.0  ;;  %v2123_v41 = vadd.f32 %v4339_v14, %v2122_v39  ;;  %v3586_v42 = vpop.f32.mrb[126].mxu0 }
 0x1e2   : > { %2698 = vst.msk [vmem:[%s4347_s12 + $0x88] sm:$0xff] %vm364_vm0, %v2128_v38  ;;  %v1451_v44 = vadd.f32 %v4379_v47, %v3586_v42  ;;  %v1445_v45 = vpop.f32.mrb[127].mxu0 }
 0x1e3   : > { %2697 = vst.msk [vmem:[%s4347_s12 + $0x80] sm:$0xff] %vm364_vm0, %v2123_v41  ;;  %v1446_v46 = vadd.f32 %v4379_v47, %v1445_v45  ;;  %v3620_v48 = vpop.f32.mrb[18].mxu1  ;;  %3777 = vmatprep.mubr.msk.f32.mxu1 %vm1591_vm1, %v1578_v40 }
 0x1e4   : > { %v2138_v49 = vadd.f32 %v3620_v48, %v4339_v14  ;;  %v2132_v50 = vpop.f32.mrb[19].mxu1  ;;  %3778 = vmatmul.mubr.msk.f32.gmra.mrb[124].mxu1 %vm1591_vm1, %v1579_v43  ;;  %v1581_v53 = vmax.f32 %v1451_v44, 0.0 }
 0x1e5   : > { %v1580_v51 = vmax.f32 %v1446_v46, 0.0  ;;  %v2133_v52 = vadd.f32 %v4339_v14, %v2132_v50 }
 0x1e6   : > { %2700 = vst.msk [vmem:[%s4347_s12 + $0x98] sm:$0xff] %vm364_vm0, %v2138_v49 }
 0x1e7   : > { %2699 = vst.msk [vmem:[%s4347_s12 + $0x90] sm:$0xff] %vm364_vm0, %v2133_v52  ;;  %v3623_v47 = vpop.f32.mrb[20].mxu1  ;;  %3780 = vmatprep.mubr.msk.f32.mxu1 %vm1591_vm1, %v1580_v51 }
 0x1e8   : > { %v2148_v54 = vadd.f32 %v3623_v47, %v4339_v14  ;;  %v2142_v55 = vpop.f32.mrb[21].mxu1  ;;  %3781 = vmatmul.mubr.msk.f32.gmra.mrb[126].mxu1 %vm1591_vm1, %v1581_v53 }
 0x1e9   : > { %v2143_v56 = vadd.f32 %v4339_v14, %v2142_v55 }
 0x1ea   : > { %2702 = vst.msk [vmem:[%s4347_s12 + $0xa8] sm:$0xff] %vm364_vm0, %v2148_v54 }
 0x1eb   : > { %2701 = vst.msk [vmem:[%s4347_s12 + $0xa0] sm:$0xff] %vm364_vm0, %v2143_v56  ;;  %v3626_v57 = vpop.f32.mrb[22].mxu1 }
 0x1ec   : > { %v2158_v58 = vadd.f32 %v3626_v57, %v4339_v14  ;;  %v2152_v59 = vpop.f32.mrb[23].mxu1 }
 0x1ed   : > { %v2153_v60 = vadd.f32 %v4339_v14, %v2152_v59 }
 0x1ee   : > { %2704 = vst.msk [vmem:[%s4347_s12 + $0xb8] sm:$0xff] %vm364_vm0, %v2158_v58 }
 0x1ef   : > { %2703 = vst.msk [vmem:[%s4347_s12 + $0xb0] sm:$0xff] %vm364_vm0, %v2153_v60  ;;  %v3629_v61 = vpop.f32.mrb[24].mxu1 }
 0x1f0   : > { %v2168_v62 = vadd.f32 %v3629_v61, %v4339_v14  ;;  %v2162_v63 = vpop.f32.mrb[25].mxu1 }
 0x1f1   : > { %v2163_v0 = vadd.f32 %v4339_v14, %v2162_v63 }
 0x1f2   : > { %2706 = vst.msk [vmem:[%s4347_s12 + $0xc8] sm:$0xff] %vm364_vm0, %v2168_v62 }
 0x1f3   : > { %2705 = vst.msk [vmem:[%s4347_s12 + $0xc0] sm:$0xff] %vm364_vm0, %v2163_v0  ;;  %v3632_v1 = vpop.f32.mrb[26].mxu1 }
 0x1f4   : > { %v2178_v2 = vadd.f32 %v3632_v1, %v4339_v14  ;;  %v2172_v3 = vpop.f32.mrb[27].mxu1 }
 0x1f5   : > { %v2173_v4 = vadd.f32 %v4339_v14, %v2172_v3 }
 0x1f6   : > { %2708 = vst.msk [vmem:[%s4347_s12 + $0xd8] sm:$0xff] %vm364_vm0, %v2178_v2 }
 0x1f7   : > { %2707 = vst.msk [vmem:[%s4347_s12 + $0xd0] sm:$0xff] %vm364_vm0, %v2173_v4  ;;  %v3635_v5 = vpop.f32.mrb[28].mxu1 }
 0x1f8   : > { %v2188_v6 = vadd.f32 %v3635_v5, %v4339_v14  ;;  %v2182_v7 = vpop.f32.mrb[29].mxu1 }
 0x1f9   : > { %v2183_v8 = vadd.f32 %v4339_v14, %v2182_v7 }
 0x1fa   : > { %2710 = vst.msk [vmem:[%s4347_s12 + $0xe8] sm:$0xff] %vm364_vm0, %v2188_v6 }
 0x1fb   : > { %2709 = vst.msk [vmem:[%s4347_s12 + $0xe0] sm:$0xff] %vm364_vm0, %v2183_v8  ;;  %v3638_v9 = vpop.f32.mrb[30].mxu1 }
 0x1fc   : > { %v2198_v10 = vadd.f32 %v3638_v9, %v4339_v14  ;;  %v2192_v11 = vpop.f32.mrb[31].mxu1 }
 0x1fd   : > { %v2193_v12 = vadd.f32 %v4339_v14, %v2192_v11 }
 0x1fe   : > { %2712 = vst.msk [vmem:[%s4347_s12 + $0xf8] sm:$0xff] %vm364_vm0, %v2198_v10 }
 0x1ff   : > { %2711 = vst.msk [vmem:[%s4347_s12 + $0xf0] sm:$0xff] %vm364_vm0, %v2193_v12  ;;  %v3641_v13 = vpop.f32.mrb[32].mxu1 }
 0x200   : > { %v2208_v15 = vadd.f32 %v3641_v13, %v4339_v14  ;;  %v2202_v16 = vpop.f32.mrb[33].mxu1 }
 0x201   : > { %v2203_v17 = vadd.f32 %v4339_v14, %v2202_v16 }
 0x202   : > { %2714 = vst.msk [vmem:[%s4347_s12 + $0x108] sm:$0xff] %vm364_vm0, %v2208_v15 }
 0x203   : > { %2713 = vst.msk [vmem:[%s4347_s12 + $0x100] sm:$0xff] %vm364_vm0, %v2203_v17  ;;  %v3644_v18 = vpop.f32.mrb[34].mxu1 }
 0x204   : > { %v2218_v19 = vadd.f32 %v3644_v18, %v4339_v14  ;;  %v2212_v20 = vpop.f32.mrb[35].mxu1 }
 0x205   : > { %v2213_v21 = vadd.f32 %v4339_v14, %v2212_v20 }
 0x206   : > { %2716 = vst.msk [vmem:[%s4347_s12 + $0x118] sm:$0xff] %vm364_vm0, %v2218_v19 }
 0x207   : > { %2715 = vst.msk [vmem:[%s4347_s12 + $0x110] sm:$0xff] %vm364_vm0, %v2213_v21  ;;  %v3647_v22 = vpop.f32.mrb[36].mxu1 }
 0x208   : > { %v2228_v23 = vadd.f32 %v3647_v22, %v4339_v14  ;;  %v2222_v24 = vpop.f32.mrb[37].mxu1 }
 0x209   : > { %v2223_v25 = vadd.f32 %v4339_v14, %v2222_v24 }
 0x20a   : > { %2718 = vst.msk [vmem:[%s4347_s12 + $0x128] sm:$0xff] %vm364_vm0, %v2228_v23 }
 0x20b   : > { %2717 = vst.msk [vmem:[%s4347_s12 + $0x120] sm:$0xff] %vm364_vm0, %v2223_v25  ;;  %v3650_v26 = vpop.f32.mrb[38].mxu1 }
 0x20c   : > { %v2238_v27 = vadd.f32 %v3650_v26, %v4339_v14  ;;  %v2232_v28 = vpop.f32.mrb[39].mxu1 }
 0x20d   : > { %v2233_v29 = vadd.f32 %v4339_v14, %v2232_v28 }
 0x20e   : > { %2720 = vst.msk [vmem:[%s4347_s12 + $0x138] sm:$0xff] %vm364_vm0, %v2238_v27 }
 0x20f   : > { %2719 = vst.msk [vmem:[%s4347_s12 + $0x130] sm:$0xff] %vm364_vm0, %v2233_v29  ;;  %v3653_v30 = vpop.f32.mrb[40].mxu1 }
 0x210   : > { %v2248_v31 = vadd.f32 %v3653_v30, %v4339_v14  ;;  %v2242_v32 = vpop.f32.mrb[41].mxu1 }
 0x211   : > { %v2243_v33 = vadd.f32 %v4339_v14, %v2242_v32 }
 0x212   : > { %2722 = vst.msk [vmem:[%s4347_s12 + $0x148] sm:$0xff] %vm364_vm0, %v2248_v31 }
 0x213   : > { %2721 = vst.msk [vmem:[%s4347_s12 + $0x140] sm:$0xff] %vm364_vm0, %v2243_v33  ;;  %v3656_v34 = vpop.f32.mrb[42].mxu1 }
 0x214   : > { %v2258_v35 = vadd.f32 %v3656_v34, %v4339_v14  ;;  %v2252_v36 = vpop.f32.mrb[43].mxu1 }
 0x215   : > { %v2253_v37 = vadd.f32 %v4339_v14, %v2252_v36 }
 0x216   : > { %2724 = vst.msk [vmem:[%s4347_s12 + $0x158] sm:$0xff] %vm364_vm0, %v2258_v35 }
 0x217   : > { %2723 = vst.msk [vmem:[%s4347_s12 + $0x150] sm:$0xff] %vm364_vm0, %v2253_v37  ;;  %v3659_v38 = vpop.f32.mrb[44].mxu1 }
 0x218   : > { %v2268_v39 = vadd.f32 %v3659_v38, %v4339_v14  ;;  %v2262_v40 = vpop.f32.mrb[45].mxu1 }
 0x219   : > { %v2263_v41 = vadd.f32 %v4339_v14, %v2262_v40 }
 0x21a   : > { %2726 = vst.msk [vmem:[%s4347_s12 + $0x168] sm:$0xff] %vm364_vm0, %v2268_v39 }
 0x21b   : > { %2725 = vst.msk [vmem:[%s4347_s12 + $0x160] sm:$0xff] %vm364_vm0, %v2263_v41  ;;  %v3662_v42 = vpop.f32.mrb[46].mxu1 }
 0x21c   : > { %v2278_v43 = vadd.f32 %v3662_v42, %v4339_v14  ;;  %v2272_v44 = vpop.f32.mrb[47].mxu1 }
 0x21d   : > { %v2273_v45 = vadd.f32 %v4339_v14, %v2272_v44 }
 0x21e   : > { %2728 = vst.msk [vmem:[%s4347_s12 + $0x178] sm:$0xff] %vm364_vm0, %v2278_v43 }
 0x21f   : > { %2727 = vst.msk [vmem:[%s4347_s12 + $0x170] sm:$0xff] %vm364_vm0, %v2273_v45  ;;  %v3665_v46 = vpop.f32.mrb[48].mxu1 }
 0x220   : > { %v2288_v48 = vadd.f32 %v3665_v46, %v4339_v14  ;;  %v2282_v49 = vpop.f32.mrb[49].mxu1 }
 0x221   : > { %v2283_v50 = vadd.f32 %v4339_v14, %v2282_v49 }
 0x222   : > { %2730 = vst.msk [vmem:[%s4347_s12 + $0x188] sm:$0xff] %vm364_vm0, %v2288_v48 }
 0x223   : > { %2729 = vst.msk [vmem:[%s4347_s12 + $0x180] sm:$0xff] %vm364_vm0, %v2283_v50  ;;  %v3668_v51 = vpop.f32.mrb[50].mxu1 }
 0x224   : > { %v2298_v52 = vadd.f32 %v3668_v51, %v4339_v14  ;;  %v2292_v53 = vpop.f32.mrb[51].mxu1 }
 0x225   : > { %v2293_v47 = vadd.f32 %v4339_v14, %v2292_v53 }
 0x226   : > { %2732 = vst.msk [vmem:[%s4347_s12 + $0x198] sm:$0xff] %vm364_vm0, %v2298_v52 }
 0x227   : > { %2731 = vst.msk [vmem:[%s4347_s12 + $0x190] sm:$0xff] %vm364_vm0, %v2293_v47  ;;  %v3671_v54 = vpop.f32.mrb[52].mxu1 }
 0x228   : > { %v2308_v55 = vadd.f32 %v3671_v54, %v4339_v14  ;;  %v2302_v56 = vpop.f32.mrb[53].mxu1 }
 0x229   : > { %v2303_v57 = vadd.f32 %v4339_v14, %v2302_v56 }
 0x22a   : > { %2734 = vst.msk [vmem:[%s4347_s12 + $0x1a8] sm:$0xff] %vm364_vm0, %v2308_v55 }
 0x22b   : > { %2733 = vst.msk [vmem:[%s4347_s12 + $0x1a0] sm:$0xff] %vm364_vm0, %v2303_v57  ;;  %v3674_v58 = vpop.f32.mrb[54].mxu1 }
 0x22c   : > { %v2318_v59 = vadd.f32 %v3674_v58, %v4339_v14  ;;  %v2312_v60 = vpop.f32.mrb[55].mxu1 }
 0x22d   : > { %v2313_v61 = vadd.f32 %v4339_v14, %v2312_v60 }
 0x22e   : > { %2736 = vst.msk [vmem:[%s4347_s12 + $0x1b8] sm:$0xff] %vm364_vm0, %v2318_v59 }
 0x22f   : > { %2735 = vst.msk [vmem:[%s4347_s12 + $0x1b0] sm:$0xff] %vm364_vm0, %v2313_v61  ;;  %v3677_v62 = vpop.f32.mrb[56].mxu1 }
 0x230   : > { %v2328_v63 = vadd.f32 %v3677_v62, %v4339_v14  ;;  %v2322_v0 = vpop.f32.mrb[57].mxu1 }
 0x231   : > { %v2323_v1 = vadd.f32 %v4339_v14, %v2322_v0 }
 0x232   : > { %2738 = vst.msk [vmem:[%s4347_s12 + $0x1c8] sm:$0xff] %vm364_vm0, %v2328_v63 }
 0x233   : > { %2737 = vst.msk [vmem:[%s4347_s12 + $0x1c0] sm:$0xff] %vm364_vm0, %v2323_v1  ;;  %v3680_v2 = vpop.f32.mrb[58].mxu1 }
 0x234   : > { %v2338_v3 = vadd.f32 %v3680_v2, %v4339_v14  ;;  %v2332_v4 = vpop.f32.mrb[59].mxu1 }
 0x235   : > { %v2333_v5 = vadd.f32 %v4339_v14, %v2332_v4 }
 0x236   : > { %2740 = vst.msk [vmem:[%s4347_s12 + $0x1d8] sm:$0xff] %vm364_vm0, %v2338_v3 }
 0x237   : > { %2739 = vst.msk [vmem:[%s4347_s12 + $0x1d0] sm:$0xff] %vm364_vm0, %v2333_v5  ;;  %v3683_v6 = vpop.f32.mrb[60].mxu1 }
 0x238   : > { %v2348_v7 = vadd.f32 %v3683_v6, %v4339_v14  ;;  %v2342_v8 = vpop.f32.mrb[61].mxu1 }
 0x239   : > { %v2343_v9 = vadd.f32 %v4339_v14, %v2342_v8 }
 0x23a   : > { %2742 = vst.msk [vmem:[%s4347_s12 + $0x1e8] sm:$0xff] %vm364_vm0, %v2348_v7 }
 0x23b   : > { %2741 = vst.msk [vmem:[%s4347_s12 + $0x1e0] sm:$0xff] %vm364_vm0, %v2343_v9  ;;  %v3686_v10 = vpop.f32.mrb[62].mxu1 }
 0x23c   : > { %v2358_v11 = vadd.f32 %v3686_v10, %v4339_v14  ;;  %v2352_v12 = vpop.f32.mrb[63].mxu1 }
 0x23d   : > { %v2353_v13 = vadd.f32 %v4339_v14, %v2352_v12 }
 0x23e   : > { %2744 = vst.msk [vmem:[%s4347_s12 + $0x1f8] sm:$0xff] %vm364_vm0, %v2358_v11 }
 0x23f   : > { %2743 = vst.msk [vmem:[%s4347_s12 + $0x1f0] sm:$0xff] %vm364_vm0, %v2353_v13  ;;  %v3689_v15 = vpop.f32.mrb[64].mxu1 }
 0x240   : > { %v2368_v16 = vadd.f32 %v3689_v15, %v4339_v14  ;;  %v2362_v17 = vpop.f32.mrb[65].mxu1 }
 0x241   : > { %v2363_v18 = vadd.f32 %v4339_v14, %v2362_v17 }
 0x242   : > { %2746 = vst.msk [vmem:[%s4347_s12 + $0x208] sm:$0xff] %vm364_vm0, %v2368_v16 }
 0x243   : > { %2745 = vst.msk [vmem:[%s4347_s12 + $0x200] sm:$0xff] %vm364_vm0, %v2363_v18  ;;  %v3692_v19 = vpop.f32.mrb[66].mxu1 }
 0x244   : > { %v2378_v20 = vadd.f32 %v3692_v19, %v4339_v14  ;;  %v2372_v21 = vpop.f32.mrb[67].mxu1 }
 0x245   : > { %v2373_v22 = vadd.f32 %v4339_v14, %v2372_v21 }
 0x246   : > { %2748 = vst.msk [vmem:[%s4347_s12 + $0x218] sm:$0xff] %vm364_vm0, %v2378_v20 }
 0x247   : > { %2747 = vst.msk [vmem:[%s4347_s12 + $0x210] sm:$0xff] %vm364_vm0, %v2373_v22  ;;  %v3695_v23 = vpop.f32.mrb[68].mxu1 }
 0x248   : > { %v2388_v24 = vadd.f32 %v3695_v23, %v4339_v14  ;;  %v2382_v25 = vpop.f32.mrb[69].mxu1 }
 0x249   : > { %v2383_v26 = vadd.f32 %v4339_v14, %v2382_v25 }
 0x24a   : > { %2750 = vst.msk [vmem:[%s4347_s12 + $0x228] sm:$0xff] %vm364_vm0, %v2388_v24 }
 0x24b   : > { %2749 = vst.msk [vmem:[%s4347_s12 + $0x220] sm:$0xff] %vm364_vm0, %v2383_v26  ;;  %v3698_v27 = vpop.f32.mrb[70].mxu1 }
 0x24c   : > { %v2398_v28 = vadd.f32 %v3698_v27, %v4339_v14  ;;  %v2392_v29 = vpop.f32.mrb[71].mxu1 }
 0x24d   : > { %v2393_v30 = vadd.f32 %v4339_v14, %v2392_v29 }
 0x24e   : > { %2752 = vst.msk [vmem:[%s4347_s12 + $0x238] sm:$0xff] %vm364_vm0, %v2398_v28 }
 0x24f   : > { %2751 = vst.msk [vmem:[%s4347_s12 + $0x230] sm:$0xff] %vm364_vm0, %v2393_v30  ;;  %v3701_v31 = vpop.f32.mrb[72].mxu1 }
 0x250   : > { %v2408_v32 = vadd.f32 %v3701_v31, %v4339_v14  ;;  %v2402_v33 = vpop.f32.mrb[73].mxu1 }
 0x251   : > { %v2403_v34 = vadd.f32 %v4339_v14, %v2402_v33 }
 0x252   : > { %2754 = vst.msk [vmem:[%s4347_s12 + $0x248] sm:$0xff] %vm364_vm0, %v2408_v32 }
 0x253   : > { %2753 = vst.msk [vmem:[%s4347_s12 + $0x240] sm:$0xff] %vm364_vm0, %v2403_v34  ;;  %v3704_v35 = vpop.f32.mrb[74].mxu1 }
 0x254   : > { %v2418_v36 = vadd.f32 %v3704_v35, %v4339_v14  ;;  %v2412_v37 = vpop.f32.mrb[75].mxu1 }
 0x255   : > { %v2413_v38 = vadd.f32 %v4339_v14, %v2412_v37 }
 0x256   : > { %2756 = vst.msk [vmem:[%s4347_s12 + $0x258] sm:$0xff] %vm364_vm0, %v2418_v36 }
 0x257   : > { %2755 = vst.msk [vmem:[%s4347_s12 + $0x250] sm:$0xff] %vm364_vm0, %v2413_v38  ;;  %v3707_v39 = vpop.f32.mrb[76].mxu1 }
 0x258   : > { %v2428_v40 = vadd.f32 %v3707_v39, %v4339_v14  ;;  %v2422_v41 = vpop.f32.mrb[77].mxu1 }
 0x259   : > { %v2423_v42 = vadd.f32 %v4339_v14, %v2422_v41 }
 0x25a   : > { %2758 = vst.msk [vmem:[%s4347_s12 + $0x268] sm:$0xff] %vm364_vm0, %v2428_v40 }
 0x25b   : > { %2757 = vst.msk [vmem:[%s4347_s12 + $0x260] sm:$0xff] %vm364_vm0, %v2423_v42  ;;  %v3710_v43 = vpop.f32.mrb[78].mxu1 }
 0x25c   : > { %v2438_v44 = vadd.f32 %v3710_v43, %v4339_v14  ;;  %v2432_v45 = vpop.f32.mrb[79].mxu1 }
 0x25d   : > { %v2433_v46 = vadd.f32 %v4339_v14, %v2432_v45 }
 0x25e   : > { %2760 = vst.msk [vmem:[%s4347_s12 + $0x278] sm:$0xff] %vm364_vm0, %v2438_v44 }
 0x25f   : > { %2759 = vst.msk [vmem:[%s4347_s12 + $0x270] sm:$0xff] %vm364_vm0, %v2433_v46  ;;  %v3713_v48 = vpop.f32.mrb[80].mxu1 }
 0x260   : > { %v2448_v49 = vadd.f32 %v3713_v48, %v4339_v14  ;;  %v2442_v50 = vpop.f32.mrb[81].mxu1 }
 0x261   : > { %v2443_v51 = vadd.f32 %v4339_v14, %v2442_v50 }
 0x262   : > { %2762 = vst.msk [vmem:[%s4347_s12 + $0x288] sm:$0xff] %vm364_vm0, %v2448_v49 }
 0x263   : > { %2761 = vst.msk [vmem:[%s4347_s12 + $0x280] sm:$0xff] %vm364_vm0, %v2443_v51  ;;  %v3716_v52 = vpop.f32.mrb[82].mxu1 }
 0x264   : > { %v2458_v53 = vadd.f32 %v3716_v52, %v4339_v14  ;;  %v2452_v47 = vpop.f32.mrb[83].mxu1 }
 0x265   : > { %v2453_v54 = vadd.f32 %v4339_v14, %v2452_v47 }
 0x266   : > { %2764 = vst.msk [vmem:[%s4347_s12 + $0x298] sm:$0xff] %vm364_vm0, %v2458_v53 }
 0x267   : > { %2763 = vst.msk [vmem:[%s4347_s12 + $0x290] sm:$0xff] %vm364_vm0, %v2453_v54  ;;  %v3719_v55 = vpop.f32.mrb[84].mxu1 }
 0x268   : > { %v2468_v56 = vadd.f32 %v3719_v55, %v4339_v14  ;;  %v2462_v57 = vpop.f32.mrb[85].mxu1 }
 0x269   : > { %v2463_v58 = vadd.f32 %v4339_v14, %v2462_v57 }
 0x26a   : > { %2766 = vst.msk [vmem:[%s4347_s12 + $0x2a8] sm:$0xff] %vm364_vm0, %v2468_v56 }
 0x26b   : > { %2765 = vst.msk [vmem:[%s4347_s12 + $0x2a0] sm:$0xff] %vm364_vm0, %v2463_v58  ;;  %v3722_v59 = vpop.f32.mrb[86].mxu1 }
 0x26c   : > { %v2478_v60 = vadd.f32 %v3722_v59, %v4339_v14  ;;  %v2472_v61 = vpop.f32.mrb[87].mxu1 }
 0x26d   : > { %v2473_v62 = vadd.f32 %v4339_v14, %v2472_v61 }
 0x26e   : > { %2768 = vst.msk [vmem:[%s4347_s12 + $0x2b8] sm:$0xff] %vm364_vm0, %v2478_v60 }
 0x26f   : > { %2767 = vst.msk [vmem:[%s4347_s12 + $0x2b0] sm:$0xff] %vm364_vm0, %v2473_v62  ;;  %v3725_v63 = vpop.f32.mrb[88].mxu1 }
 0x270   : > { %v2488_v0 = vadd.f32 %v3725_v63, %v4339_v14  ;;  %v2482_v1 = vpop.f32.mrb[89].mxu1 }
 0x271   : > { %v2483_v2 = vadd.f32 %v4339_v14, %v2482_v1 }
 0x272   : > { %2770 = vst.msk [vmem:[%s4347_s12 + $0x2c8] sm:$0xff] %vm364_vm0, %v2488_v0 }
 0x273   : > { %2769 = vst.msk [vmem:[%s4347_s12 + $0x2c0] sm:$0xff] %vm364_vm0, %v2483_v2  ;;  %v3728_v3 = vpop.f32.mrb[90].mxu1 }
 0x274   : > { %v2498_v4 = vadd.f32 %v3728_v3, %v4339_v14  ;;  %v2492_v5 = vpop.f32.mrb[91].mxu1 }
 0x275   : > { %v2493_v6 = vadd.f32 %v4339_v14, %v2492_v5 }
 0x276   : > { %2772 = vst.msk [vmem:[%s4347_s12 + $0x2d8] sm:$0xff] %vm364_vm0, %v2498_v4 }
 0x277   : > { %2771 = vst.msk [vmem:[%s4347_s12 + $0x2d0] sm:$0xff] %vm364_vm0, %v2493_v6  ;;  %v3731_v7 = vpop.f32.mrb[92].mxu1 }
 0x278   : > { %v2508_v8 = vadd.f32 %v3731_v7, %v4339_v14  ;;  %v2502_v9 = vpop.f32.mrb[93].mxu1 }
 0x279   : > { %v2503_v10 = vadd.f32 %v4339_v14, %v2502_v9 }
 0x27a   : > { %2774 = vst.msk [vmem:[%s4347_s12 + $0x2e8] sm:$0xff] %vm364_vm0, %v2508_v8 }
 0x27b   : > { %2773 = vst.msk [vmem:[%s4347_s12 + $0x2e0] sm:$0xff] %vm364_vm0, %v2503_v10  ;;  %v3734_v11 = vpop.f32.mrb[94].mxu1 }
 0x27c   : > { %v2518_v12 = vadd.f32 %v3734_v11, %v4339_v14  ;;  %v2512_v13 = vpop.f32.mrb[95].mxu1 }
 0x27d   : > { %v2513_v15 = vadd.f32 %v4339_v14, %v2512_v13 }
 0x27e   : > { %2776 = vst.msk [vmem:[%s4347_s12 + $0x2f8] sm:$0xff] %vm364_vm0, %v2518_v12 }
 0x27f   : > { %2775 = vst.msk [vmem:[%s4347_s12 + $0x2f0] sm:$0xff] %vm364_vm0, %v2513_v15  ;;  %v3737_v16 = vpop.f32.mrb[96].mxu1 }
 0x280   : > { %v2528_v17 = vadd.f32 %v3737_v16, %v4339_v14  ;;  %v2522_v18 = vpop.f32.mrb[97].mxu1 }
 0x281   : > { %v2523_v19 = vadd.f32 %v4339_v14, %v2522_v18 }
 0x282   : > { %2778 = vst.msk [vmem:[%s4347_s12 + $0x308] sm:$0xff] %vm364_vm0, %v2528_v17 }
 0x283   : > { %2777 = vst.msk [vmem:[%s4347_s12 + $0x300] sm:$0xff] %vm364_vm0, %v2523_v19  ;;  %v3740_v20 = vpop.f32.mrb[98].mxu1 }
 0x284   : > { %v2538_v21 = vadd.f32 %v3740_v20, %v4339_v14  ;;  %v2532_v22 = vpop.f32.mrb[99].mxu1 }
 0x285   : > { %v2533_v23 = vadd.f32 %v4339_v14, %v2532_v22 }
 0x286   : > { %2780 = vst.msk [vmem:[%s4347_s12 + $0x318] sm:$0xff] %vm364_vm0, %v2538_v21 }
 0x287   : > { %2779 = vst.msk [vmem:[%s4347_s12 + $0x310] sm:$0xff] %vm364_vm0, %v2533_v23  ;;  %v3743_v24 = vpop.f32.mrb[100].mxu1 }
 0x288   : > { %v2548_v25 = vadd.f32 %v3743_v24, %v4339_v14  ;;  %v2542_v26 = vpop.f32.mrb[101].mxu1 }
 0x289   : > { %v2543_v27 = vadd.f32 %v4339_v14, %v2542_v26 }
 0x28a   : > { %2782 = vst.msk [vmem:[%s4347_s12 + $0x328] sm:$0xff] %vm364_vm0, %v2548_v25 }
 0x28b   : > { %2781 = vst.msk [vmem:[%s4347_s12 + $0x320] sm:$0xff] %vm364_vm0, %v2543_v27  ;;  %v3746_v28 = vpop.f32.mrb[102].mxu1 }
 0x28c   : > { %v2558_v29 = vadd.f32 %v3746_v28, %v4339_v14  ;;  %v2552_v30 = vpop.f32.mrb[103].mxu1 }
 0x28d   : > { %v2553_v31 = vadd.f32 %v4339_v14, %v2552_v30 }
 0x28e   : > { %2784 = vst.msk [vmem:[%s4347_s12 + $0x338] sm:$0xff] %vm364_vm0, %v2558_v29 }
 0x28f   : > { %2783 = vst.msk [vmem:[%s4347_s12 + $0x330] sm:$0xff] %vm364_vm0, %v2553_v31  ;;  %v3749_v32 = vpop.f32.mrb[104].mxu1 }
 0x290   : > { %v2568_v33 = vadd.f32 %v3749_v32, %v4339_v14  ;;  %v2562_v34 = vpop.f32.mrb[105].mxu1 }
 0x291   : > { %v2563_v35 = vadd.f32 %v4339_v14, %v2562_v34 }
 0x292   : > { %2786 = vst.msk [vmem:[%s4347_s12 + $0x348] sm:$0xff] %vm364_vm0, %v2568_v33 }
 0x293   : > { %2785 = vst.msk [vmem:[%s4347_s12 + $0x340] sm:$0xff] %vm364_vm0, %v2563_v35  ;;  %v3752_v36 = vpop.f32.mrb[106].mxu1 }
 0x294   : > { %v2578_v37 = vadd.f32 %v3752_v36, %v4339_v14  ;;  %v2572_v38 = vpop.f32.mrb[107].mxu1 }
 0x295   : > { %v2573_v39 = vadd.f32 %v4339_v14, %v2572_v38 }
 0x296   : > { %2788 = vst.msk [vmem:[%s4347_s12 + $0x358] sm:$0xff] %vm364_vm0, %v2578_v37 }
 0x297   : > { %2787 = vst.msk [vmem:[%s4347_s12 + $0x350] sm:$0xff] %vm364_vm0, %v2573_v39  ;;  %v3755_v40 = vpop.f32.mrb[108].mxu1 }
 0x298   : > { %v2588_v41 = vadd.f32 %v3755_v40, %v4339_v14  ;;  %v2582_v42 = vpop.f32.mrb[109].mxu1 }
 0x299   : > { %v2583_v43 = vadd.f32 %v4339_v14, %v2582_v42 }
 0x29a   : > { %2790 = vst.msk [vmem:[%s4347_s12 + $0x368] sm:$0xff] %vm364_vm0, %v2588_v41 }
 0x29b   : > { %2789 = vst.msk [vmem:[%s4347_s12 + $0x360] sm:$0xff] %vm364_vm0, %v2583_v43  ;;  %v3758_v44 = vpop.f32.mrb[110].mxu1 }
 0x29c   : > { %v2598_v45 = vadd.f32 %v3758_v44, %v4339_v14  ;;  %v2592_v46 = vpop.f32.mrb[111].mxu1 }
 0x29d   : > { %v2593_v48 = vadd.f32 %v4339_v14, %v2592_v46 }
 0x29e   : > { %2792 = vst.msk [vmem:[%s4347_s12 + $0x378] sm:$0xff] %vm364_vm0, %v2598_v45 }
 0x29f   : > { %2791 = vst.msk [vmem:[%s4347_s12 + $0x370] sm:$0xff] %vm364_vm0, %v2593_v48  ;;  %v3761_v49 = vpop.f32.mrb[112].mxu1 }
 0x2a0   : > { %v2608_v50 = vadd.f32 %v3761_v49, %v4339_v14  ;;  %v2602_v51 = vpop.f32.mrb[113].mxu1 }
 0x2a1   : > { %v2603_v52 = vadd.f32 %v4339_v14, %v2602_v51 }
 0x2a2   : > { %2794 = vst.msk [vmem:[%s4347_s12 + $0x388] sm:$0xff] %vm364_vm0, %v2608_v50 }
 0x2a3   : > { %2793 = vst.msk [vmem:[%s4347_s12 + $0x380] sm:$0xff] %vm364_vm0, %v2603_v52  ;;  %v3764_v53 = vpop.f32.mrb[114].mxu1 }
 0x2a4   : > { %v2618_v47 = vadd.f32 %v3764_v53, %v4339_v14  ;;  %v2612_v54 = vpop.f32.mrb[115].mxu1 }
 0x2a5   : > { %v2613_v55 = vadd.f32 %v4339_v14, %v2612_v54 }
 0x2a6   : > { %2796 = vst.msk [vmem:[%s4347_s12 + $0x398] sm:$0xff] %vm364_vm0, %v2618_v47 }
 0x2a7   : > { %2795 = vst.msk [vmem:[%s4347_s12 + $0x390] sm:$0xff] %vm364_vm0, %v2613_v55  ;;  %v3767_v56 = vpop.f32.mrb[116].mxu1 }
 0x2a8   : > { %v2628_v57 = vadd.f32 %v3767_v56, %v4339_v14  ;;  %v2622_v58 = vpop.f32.mrb[117].mxu1 }
 0x2a9   : > { %v2623_v59 = vadd.f32 %v4339_v14, %v2622_v58 }
 0x2aa   : > { %2798 = vst.msk [vmem:[%s4347_s12 + $0x3a8] sm:$0xff] %vm364_vm0, %v2628_v57 }
 0x2ab   : > { %2797 = vst.msk [vmem:[%s4347_s12 + $0x3a0] sm:$0xff] %vm364_vm0, %v2623_v59  ;;  %v3770_v60 = vpop.f32.mrb[118].mxu1 }
 0x2ac   : > { %v2638_v61 = vadd.f32 %v3770_v60, %v4339_v14  ;;  %v2632_v62 = vpop.f32.mrb[119].mxu1 }
 0x2ad   : > { %v2633_v63 = vadd.f32 %v4339_v14, %v2632_v62 }
 0x2ae   : > { %2800 = vst.msk [vmem:[%s4347_s12 + $0x3b8] sm:$0xff] %vm364_vm0, %v2638_v61 }
 0x2af   : > { %2799 = vst.msk [vmem:[%s4347_s12 + $0x3b0] sm:$0xff] %vm364_vm0, %v2633_v63  ;;  %v3773_v0 = vpop.f32.mrb[120].mxu1 }
 0x2b0   : > { %v2648_v1 = vadd.f32 %v3773_v0, %v4339_v14  ;;  %v2642_v2 = vpop.f32.mrb[121].mxu1 }
 0x2b1   : > { %v2643_v3 = vadd.f32 %v4339_v14, %v2642_v2 }
 0x2b2   : > { %2802 = vst.msk [vmem:[%s4347_s12 + $0x3c8] sm:$0xff] %vm364_vm0, %v2648_v1 }
 0x2b3   : > { %2801 = vst.msk [vmem:[%s4347_s12 + $0x3c0] sm:$0xff] %vm364_vm0, %v2643_v3  ;;  %v3776_v4 = vpop.f32.mrb[122].mxu1 }
 0x2b4   : > { %v2658_v5 = vadd.f32 %v3776_v4, %v4339_v14  ;;  %v2652_v6 = vpop.f32.mrb[123].mxu1 }
 0x2b5   : > { %v2653_v7 = vadd.f32 %v4339_v14, %v2652_v6 }
 0x2b6   : > { %2804 = vst.msk [vmem:[%s4347_s12 + $0x3d8] sm:$0xff] %vm364_vm0, %v2658_v5 }
 0x2b7   : > { %2803 = vst.msk [vmem:[%s4347_s12 + $0x3d0] sm:$0xff] %vm364_vm0, %v2653_v7  ;;  %v3779_v8 = vpop.f32.mrb[124].mxu1 }
 0x2b8   : > { %v2668_v9 = vadd.f32 %v3779_v8, %v4339_v14  ;;  %v2662_v10 = vpop.f32.mrb[125].mxu1 }
 0x2b9   : > { %v2663_v11 = vadd.f32 %v4339_v14, %v2662_v10 }
 0x2ba   : > { %2806 = vst.msk [vmem:[%s4347_s12 + $0x3e8] sm:$0xff] %vm364_vm0, %v2668_v9 }
 0x2bb   : > { %2805 = vst.msk [vmem:[%s4347_s12 + $0x3e0] sm:$0xff] %vm364_vm0, %v2663_v11  ;;  %v3782_v12 = vpop.f32.mrb[126].mxu1 }
 0x2bc   : > { %v2678_v13 = vadd.f32 %v3782_v12, %v4339_v14  ;;  %v2672_v15 = vpop.f32.mrb[127].mxu1 }
 0x2bd   : > { %v2673_v16 = vadd.f32 %v4339_v14, %v2672_v15 }
 0x2be   : > { %2808 = vst.msk [vmem:[%s4347_s12 + $0x3f8] sm:$0xff] %vm364_vm0, %v2678_v13 }
 0x2bf   : > { %2807 = vst.msk [vmem:[%s4347_s12 + $0x3f0] sm:$0xff] %vm364_vm0, %v2673_v16 }
 0x2c0 PF: > { %s15_s18 = sadd.s32 1, %s3802_s18  }
 0x2c1   : > { %p12_p4 = scmp.ge.s32.totalorder %s15_s18, 4  }
 0x2c3   :  { %14 = sbr.rel (!%p12_p4) target bundleno = 1 (0x1), region = 70 }

</bundles_post_ra>
